<compile_context>
chip_gen: v7x
topology: tpu7x:2x2x1
jax: 0.10.0
libtpu: 0.0.40
codegen_flags: <defaults>
</compile_context>

<pallas_src>
import functools

import jax
import jax.numpy as jnp
from jax.experimental import pallas as pl
from jax.experimental.pallas import tpu as pltpu


def _dwconv_kernel(x_ref, dw_w_ref, dw_b_ref, pw_w_ref, pw_b_ref, o_ref, xp_ref,
                   *, K, H, W, pad, tci, C_out):
    # x_ref:    (1, tci, H, W)        VMEM  input-channel tile (NCHW, unpadded)
    # dw_w_ref: (C_in, K*K)           SMEM  depthwise weights, BN scale folded in
    # dw_b_ref: (C_in,)               SMEM  depthwise folded BN bias
    # pw_w_ref: (C_in, C_out)         SMEM  pointwise weights, BN scale folded in
    # pw_b_ref: (C_out,)              SMEM  pointwise folded BN bias
    # o_ref:    (1, C_out, H, W)      VMEM  output block, reused as f32 accumulator
    # xp_ref:   (tci, H+2p, W+2p)     VMEM  zero-padded input scratch
    t = pl.program_id(1)
    c0 = t * tci                      # global offset of this input-channel tile

    @pl.when(t == 0)
    def _init():
        # Zero the padded scratch (halo stays zero for the rest of the sweep)
        # and initialize the resident output accumulator for this batch item.
        xp_ref[...] = jnp.zeros_like(xp_ref)
        o_ref[...] = jnp.zeros_like(o_ref)

    # Place the current channel tile into the interior of the padded scratch
    # (this is the only "padding" in the whole op; no HBM pad round trip).
    xp_ref[:, pad:pad + H, pad:pad + W] = x_ref[0]

    # ---- depthwise conv + folded-BN bias + SiLU (pure VPU) ----------------
    ys = []
    for ci in range(tci):
        acc = jnp.zeros((H, W), jnp.float32)
        for kh in range(K):
            for kw in range(K):
                wt = dw_w_ref[c0 + ci, kh * K + kw]          # SMEM scalar
                acc = acc + xp_ref[ci, kh:kh + H, kw:kw + W] * wt
        y = acc + dw_b_ref[c0 + ci]
        ys.append(y * jax.nn.sigmoid(y))                     # SiLU (EUP)

    # ---- pointwise 1x1 conv as VPU scalar MACs, accumulated in o_ref ------
    # (tiny C_in/C_out: an MXU dot with a 4-deep contraction would waste the
    #  systolic array; scalar-broadcast MACs keep everything on the VPU)
    for co in range(C_out):
        a = o_ref[0, co]
        for ci in range(tci):
            a = a + pw_w_ref[c0 + ci, co] * ys[ci]
        o_ref[0, co] = a

    # ---- finalize: folded-BN bias + SiLU on the accumulated output --------
    @pl.when(t == pl.num_programs(1) - 1)
    def _finalize():
        for co in range(C_out):
            z = o_ref[0, co] + pw_b_ref[co]
            o_ref[0, co] = z * jax.nn.sigmoid(z)


def _pick_ci_tile(c_in, hp, wp, budget_bytes=8 << 20):
    """Largest input-channel tile that (a) leaves >=2 reduction steps when
    possible (pipelining / accumulator path) and (b) keeps the double-buffered
    input block + padded scratch within a modest VMEM budget."""
    per_chan = hp * wp * 4 * 3          # 2x double-buffered block + padded scratch
    cap = c_in // 2 if c_in > 1 else 1
    cap = max(1, min(cap, budget_bytes // per_chan))
    for t in range(int(cap), 0, -1):
        if c_in % t == 0:
            return t
    return 1


def dwconv_forward(x_nchw, params, *, ksize):
    """DConv forward. x_nchw: (N, C_in, H, W) float32. Returns (N, C_out, H, W)."""
    eps = 1e-5
    N, C_in, H, W = x_nchw.shape
    pad = (ksize - 1) // 2
    Hp, Wp = H + 2 * pad, W + 2 * pad

    # ---- fold BatchNorm (inference) into the conv weights -----------------
    dw_scale = params["dconv_bn_gamma"] / jnp.sqrt(params["dconv_bn_var"] + eps)
    dw_bias = (params["dconv_bn_beta"]
               - params["dconv_bn_mean"] * dw_scale).astype(jnp.float32)
    # depthwise weight: (C_in, 1, K, K) -> (C_in, K*K), scaled per channel
    dw_w = (params["dconv_w"][:, 0].reshape(C_in, ksize * ksize)
            * dw_scale[:, None]).astype(jnp.float32)

    pw_scale = params["pconv_bn_gamma"] / jnp.sqrt(params["pconv_bn_var"] + eps)
    pw_bias = (params["pconv_bn_beta"]
               - params["pconv_bn_mean"] * pw_scale).astype(jnp.float32)
    # pointwise weight: (C_out, C_in, 1, 1) -> (C_in, C_out), columns scaled
    pw_w = (jnp.transpose(params["pconv_w"][:, :, 0, 0], (1, 0))
            * pw_scale[None, :]).astype(jnp.float32)
    C_out = pw_w.shape[1]

    x_nchw = x_nchw.astype(jnp.float32)

    # ---- channel tiling (reduction axis of the grid) ----------------------
    tci = _pick_ci_tile(C_in, Hp, Wp)
    n_t = C_in // tci

    kernel = functools.partial(_dwconv_kernel, K=ksize, H=H, W=W, pad=pad,
                               tci=tci, C_out=C_out)

    # ---- explicit VMEM budget (scoped defaults: 16 MiB v5e / 32 MiB v6e,v7x)
    x_blk = tci * H * W * 4
    o_blk = C_out * H * W * 4
    scratch = tci * Hp * Wp * 4
    vmem_bytes = int(min(4 * (2 * x_blk + 2 * o_blk + scratch) + (4 << 20),
                         32 * 1024 * 1024))

    # ---- cost estimate so XLA schedules around the custom call sensibly ---
    flops = 2 * N * H * W * (ksize * ksize * C_in + C_in * C_out)
    transcendentals = N * H * W * (C_in + C_out)           # one sigmoid each
    bytes_accessed = 4 * (N * C_in * H * W + N * C_out * H * W
                          + dw_w.size + pw_w.size + C_in + C_out)

    out = pl.pallas_call(
        kernel,
        out_shape=jax.ShapeDtypeStruct((N, C_out, H, W), jnp.float32),
        grid_spec=pltpu.PrefetchScalarGridSpec(
            num_scalar_prefetch=0,
            grid=(N, n_t),
            in_specs=[
                pl.BlockSpec((1, tci, H, W), lambda n, t: (n, t, 0, 0)),
                pl.BlockSpec(memory_space=pltpu.MemorySpace.SMEM),   # dw_w
                pl.BlockSpec(memory_space=pltpu.MemorySpace.SMEM),   # dw_bias
                pl.BlockSpec(memory_space=pltpu.MemorySpace.SMEM),   # pw_w
                pl.BlockSpec(memory_space=pltpu.MemorySpace.SMEM),   # pw_bias
            ],
            out_specs=pl.BlockSpec((1, C_out, H, W), lambda n, t: (n, 0, 0, 0)),
            scratch_shapes=[pltpu.VMEM((tci, Hp, Wp), jnp.float32)],
        ),
        compiler_params=pltpu.CompilerParams(
            dimension_semantics=("parallel", "arbitrary"),
            vmem_limit_bytes=vmem_bytes),
        cost_estimate=pl.CostEstimate(flops=flops,
                                      transcendentals=transcendentals,
                                      bytes_accessed=bytes_accessed),
    )(x_nchw, dw_w, dw_bias, pw_w, pw_bias)
    return out


def _reference_forward(x_nchw, params, *, ksize):
    """Pure-JAX reference (lax conv) used only for a correctness assert."""
    eps = 1e-5
    C_in = x_nchw.shape[1]
    pad = (ksize - 1) // 2

    def silu(v):
        return v * jax.nn.sigmoid(v)

    # depthwise conv (groups = C_in)
    y = jax.lax.conv_general_dilated(
        x_nchw, params["dconv_w"],
        window_strides=(1, 1), padding=[(pad, pad), (pad, pad)],
        dimension_numbers=("NCHW", "OIHW", "NCHW"),
        feature_group_count=C_in)
    s = (params["dconv_bn_gamma"] / jnp.sqrt(params["dconv_bn_var"] + eps))
    b = params["dconv_bn_beta"] - params["dconv_bn_mean"] * s
    y = silu(y * s[None, :, None, None] + b[None, :, None, None])

    # pointwise 1x1 conv
    z = jax.lax.conv_general_dilated(
        y, params["pconv_w"],
        window_strides=(1, 1), padding=[(0, 0), (0, 0)],
        dimension_numbers=("NCHW", "OIHW", "NCHW"))
    s2 = (params["pconv_bn_gamma"] / jnp.sqrt(params["pconv_bn_var"] + eps))
    b2 = params["pconv_bn_beta"] - params["pconv_bn_mean"] * s2
    return silu(z * s2[None, :, None, None] + b2[None, :, None, None])


if __name__ == "__main__":
    N, C_in, H, W = 2, 4, 16, 16
    C_out, K = 8, 3

    key = jax.random.PRNGKey(0)
    keys = jax.random.split(key, 8)

    params = {
        # depthwise conv: (C_in, 1, K, K), groups = C_in
        "dconv_w": 0.1 * jax.random.normal(keys[0], (C_in, 1, K, K), jnp.float32),
        "dconv_bn_gamma": 1.0 + 0.1 * jax.random.normal(keys[1], (C_in,), jnp.float32),
        "dconv_bn_beta": 0.1 * jax.random.normal(keys[2], (C_in,), jnp.float32),
        "dconv_bn_mean": 0.05 * jax.random.normal(keys[3], (C_in,), jnp.float32),
        "dconv_bn_var": jnp.abs(1.0 + 0.1 * jax.random.normal(keys[4], (C_in,), jnp.float32)),
        # pointwise conv: (C_out, C_in, 1, 1)
        "pconv_w": 0.1 * jax.random.normal(keys[5], (C_out, C_in, 1, 1), jnp.float32),
        "pconv_bn_gamma": 1.0 + 0.1 * jax.random.normal(keys[6], (C_out,), jnp.float32),
        "pconv_bn_beta": 0.1 * jax.random.normal(keys[7], (C_out,), jnp.float32),
        "pconv_bn_mean": jnp.zeros((C_out,), jnp.float32),
        "pconv_bn_var": jnp.ones((C_out,), jnp.float32),
    }

    x = jax.random.normal(jax.random.PRNGKey(42), (N, C_in, H, W), jnp.float32)

    out = dwconv_forward(x, params, ksize=K)
    out = jax.block_until_ready(out)

    ref = _reference_forward(x, params, ksize=K)
    assert out.shape == (N, C_out, H, W)
    assert jnp.allclose(out, ref, atol=1e-4, rtol=1e-4), "mismatch vs reference"

    print("KERNEL_OK")
</pallas_src>

<mosaic_0001>
module attributes {stable_mosaic.version = 11 : i64} {
  func.func @_dwconv_kernel(%arg0: i32, %arg1: i32, %arg2: memref<1x2x16x16xf32, #tpu.memory_space<vmem>>, %arg3: memref<4x9xf32, #tpu.memory_space<smem>>, %arg4: memref<4xf32, #tpu.memory_space<smem>>, %arg5: memref<4x8xf32, #tpu.memory_space<smem>>, %arg6: memref<8xf32, #tpu.memory_space<smem>>, %arg7: memref<1x8x16x16xf32, #tpu.memory_space<vmem>>, %arg8: memref<2x18x18xf32, #tpu.memory_space<vmem>>) attributes {dimension_semantics = [#tpu.dimension_semantics<parallel>, #tpu.dimension_semantics<arbitrary>], iteration_bounds = array<i64: 2, 2>, scalar_prefetch = 0 : i64, scratch_operands = 1 : i64, tpu.core_type = #tpu.core_type<tc>, window_params = [{transform_indices = @transform_0, window_bounds = array<i64: 1, 2, 16, 16>}, {transform_indices = @transform_1, window_bounds = array<i64: 4, 9>}, {transform_indices = @transform_2, window_bounds = array<i64: 4>}, {transform_indices = @transform_3, window_bounds = array<i64: 4, 8>}, {transform_indices = @transform_4, window_bounds = array<i64: 8>}, {transform_indices = @transform_5, window_bounds = array<i64: 1, 8, 16, 16>}]} {
    %c2_i32 = arith.constant 2 : i32
    %0 = arith.muli %arg1, %c2_i32 : i32
    %c0_i32 = arith.constant 0 : i32
    %1 = arith.cmpi eq, %arg1, %c0_i32 : i32
    %2 = arith.extui %1 : i1 to i32
    %c0_i32_0 = arith.constant 0 : i32
    %3 = arith.cmpi ne, %2, %c0_i32_0 : i32
    scf.if %3 {
      %cst_191 = arith.constant 0.000000e+00 : f32
      %314 = vector.broadcast %cst_191 : f32 to vector<2x18x18xf32>
      %c0_192 = arith.constant 0 : index
      %c0_193 = arith.constant 0 : index
      %c0_194 = arith.constant 0 : index
      %315 = vector.load %arg8[%c0_192, %c0_193, %c0_194] : memref<2x18x18xf32, #tpu.memory_space<vmem>>, vector<2x18x18xf32>
      tpu.vector_store %arg8[%c0_192, %c0_193, %c0_194], %314 {strides = array<i32>} : memref<2x18x18xf32, #tpu.memory_space<vmem>>, vector<2x18x18xf32>,
      %cst_195 = arith.constant 0.000000e+00 : f32
      %316 = vector.broadcast %cst_195 : f32 to vector<1x8x16x16xf32>
      %c0_196 = arith.constant 0 : index
      %c0_197 = arith.constant 0 : index
      %c0_198 = arith.constant 0 : index
      %c0_199 = arith.constant 0 : index
      %317 = vector.load %arg7[%c0_196, %c0_197, %c0_198, %c0_199] : memref<1x8x16x16xf32, #tpu.memory_space<vmem>>, vector<1x8x16x16xf32>
      tpu.vector_store %arg7[%c0_196, %c0_197, %c0_198, %c0_199], %316 {strides = array<i32>} : memref<1x8x16x16xf32, #tpu.memory_space<vmem>>, vector<1x8x16x16xf32>,
    } else {
    }
    %c0 = arith.constant 0 : index
    %c0_1 = arith.constant 0 : index
    %c0_2 = arith.constant 0 : index
    %c0_3 = arith.constant 0 : index
    %4 = vector.load %arg2[%c0, %c0_1, %c0_2, %c0_3] : memref<1x2x16x16xf32, #tpu.memory_space<vmem>>, vector<1x2x16x16xf32>
    %5 = vector.shape_cast %4 : vector<1x2x16x16xf32> to vector<2x16x16xf32>
    %c0_4 = arith.constant 0 : index
    %c1 = arith.constant 1 : index
    %c1_5 = arith.constant 1 : index
    %6 = vector.load %arg8[%c0_4, %c1, %c1_5] : memref<2x18x18xf32, #tpu.memory_space<vmem>>, vector<2x16x16xf32>
    tpu.vector_store %arg8[%c0_4, %c1, %c1_5], %5 {strides = array<i32>} : memref<2x18x18xf32, #tpu.memory_space<vmem>>, vector<2x16x16xf32>,
    %cst = arith.constant 0.000000e+00 : f32
    %7 = vector.broadcast %cst : f32 to vector<16x16xf32>
    %c0_i32_6 = arith.constant 0 : i32
    %8 = arith.addi %0, %c0_i32_6 : i32
    %9 = arith.index_cast %8 : i32 to index
    %c0_7 = arith.constant 0 : index
    %10 = memref.load %arg3[%9, %c0_7] : memref<4x9xf32, #tpu.memory_space<smem>>
    %c0_8 = arith.constant 0 : index
    %c0_9 = arith.constant 0 : index
    %c0_10 = arith.constant 0 : index
    %11 = vector.load %arg8[%c0_8, %c0_9, %c0_10] : memref<2x18x18xf32, #tpu.memory_space<vmem>>, vector<1x16x16xf32>
    %12 = vector.shape_cast %11 : vector<1x16x16xf32> to vector<16x16xf32>
    %13 = vector.broadcast %10 : f32 to vector<16x16xf32>
    %14 = arith.mulf %12, %13 : vector<16x16xf32>
    %15 = arith.addf %7, %14 : vector<16x16xf32>
    %c0_i32_11 = arith.constant 0 : i32
    %16 = arith.addi %0, %c0_i32_11 : i32
    %17 = arith.index_cast %16 : i32 to index
    %c1_12 = arith.constant 1 : index
    %18 = memref.load %arg3[%17, %c1_12] : memref<4x9xf32, #tpu.memory_space<smem>>
    %c0_13 = arith.constant 0 : index
    %c0_14 = arith.constant 0 : index
    %c1_15 = arith.constant 1 : index
    %19 = vector.load %arg8[%c0_13, %c0_14, %c1_15] : memref<2x18x18xf32, #tpu.memory_space<vmem>>, vector<1x16x16xf32>
    %20 = vector.shape_cast %19 : vector<1x16x16xf32> to vector<16x16xf32>
    %21 = vector.broadcast %18 : f32 to vector<16x16xf32>
    %22 = arith.mulf %20, %21 : vector<16x16xf32>
    %23 = arith.addf %15, %22 : vector<16x16xf32>
    %c0_i32_16 = arith.constant 0 : i32
    %24 = arith.addi %0, %c0_i32_16 : i32
    %25 = arith.index_cast %24 : i32 to index
    %c2 = arith.constant 2 : index
    %26 = memref.load %arg3[%25, %c2] : memref<4x9xf32, #tpu.memory_space<smem>>
    %c0_17 = arith.constant 0 : index
    %c0_18 = arith.constant 0 : index
    %c2_19 = arith.constant 2 : index
    %27 = vector.load %arg8[%c0_17, %c0_18, %c2_19] : memref<2x18x18xf32, #tpu.memory_space<vmem>>, vector<1x16x16xf32>
    %28 = vector.shape_cast %27 : vector<1x16x16xf32> to vector<16x16xf32>
    %29 = vector.broadcast %26 : f32 to vector<16x16xf32>
    %30 = arith.mulf %28, %29 : vector<16x16xf32>
    %31 = arith.addf %23, %30 : vector<16x16xf32>
    %c0_i32_20 = arith.constant 0 : i32
    %32 = arith.addi %0, %c0_i32_20 : i32
    %33 = arith.index_cast %32 : i32 to index
    %c3 = arith.constant 3 : index
    %34 = memref.load %arg3[%33, %c3] : memref<4x9xf32, #tpu.memory_space<smem>>
    %c0_21 = arith.constant 0 : index
    %c1_22 = arith.constant 1 : index
    %c0_23 = arith.constant 0 : index
    %35 = vector.load %arg8[%c0_21, %c1_22, %c0_23] : memref<2x18x18xf32, #tpu.memory_space<vmem>>, vector<1x16x16xf32>
    %36 = vector.shape_cast %35 : vector<1x16x16xf32> to vector<16x16xf32>
    %37 = vector.broadcast %34 : f32 to vector<16x16xf32>
    %38 = arith.mulf %36, %37 : vector<16x16xf32>
    %39 = arith.addf %31, %38 : vector<16x16xf32>
    %c0_i32_24 = arith.constant 0 : i32
    %40 = arith.addi %0, %c0_i32_24 : i32
    %41 = arith.index_cast %40 : i32 to index
    %c4 = arith.constant 4 : index
    %42 = memref.load %arg3[%41, %c4] : memref<4x9xf32, #tpu.memory_space<smem>>
    %c0_25 = arith.constant 0 : index
    %c1_26 = arith.constant 1 : index
    %c1_27 = arith.constant 1 : index
    %43 = vector.load %arg8[%c0_25, %c1_26, %c1_27] : memref<2x18x18xf32, #tpu.memory_space<vmem>>, vector<1x16x16xf32>
    %44 = vector.shape_cast %43 : vector<1x16x16xf32> to vector<16x16xf32>
    %45 = vector.broadcast %42 : f32 to vector<16x16xf32>
    %46 = arith.mulf %44, %45 : vector<16x16xf32>
    %47 = arith.addf %39, %46 : vector<16x16xf32>
    %c0_i32_28 = arith.constant 0 : i32
    %48 = arith.addi %0, %c0_i32_28 : i32
    %49 = arith.index_cast %48 : i32 to index
    %c5 = arith.constant 5 : index
    %50 = memref.load %arg3[%49, %c5] : memref<4x9xf32, #tpu.memory_space<smem>>
    %c0_29 = arith.constant 0 : index
    %c1_30 = arith.constant 1 : index
    %c2_31 = arith.constant 2 : index
    %51 = vector.load %arg8[%c0_29, %c1_30, %c2_31] : memref<2x18x18xf32, #tpu.memory_space<vmem>>, vector<1x16x16xf32>
    %52 = vector.shape_cast %51 : vector<1x16x16xf32> to vector<16x16xf32>
    %53 = vector.broadcast %50 : f32 to vector<16x16xf32>
    %54 = arith.mulf %52, %53 : vector<16x16xf32>
    %55 = arith.addf %47, %54 : vector<16x16xf32>
    %c0_i32_32 = arith.constant 0 : i32
    %56 = arith.addi %0, %c0_i32_32 : i32
    %57 = arith.index_cast %56 : i32 to index
    %c6 = arith.constant 6 : index
    %58 = memref.load %arg3[%57, %c6] : memref<4x9xf32, #tpu.memory_space<smem>>
    %c0_33 = arith.constant 0 : index
    %c2_34 = arith.constant 2 : index
    %c0_35 = arith.constant 0 : index
    %59 = vector.load %arg8[%c0_33, %c2_34, %c0_35] : memref<2x18x18xf32, #tpu.memory_space<vmem>>, vector<1x16x16xf32>
    %60 = vector.shape_cast %59 : vector<1x16x16xf32> to vector<16x16xf32>
    %61 = vector.broadcast %58 : f32 to vector<16x16xf32>
    %62 = arith.mulf %60, %61 : vector<16x16xf32>
    %63 = arith.addf %55, %62 : vector<16x16xf32>
    %c0_i32_36 = arith.constant 0 : i32
    %64 = arith.addi %0, %c0_i32_36 : i32
    %65 = arith.index_cast %64 : i32 to index
    %c7 = arith.constant 7 : index
    %66 = memref.load %arg3[%65, %c7] : memref<4x9xf32, #tpu.memory_space<smem>>
    %c0_37 = arith.constant 0 : index
    %c2_38 = arith.constant 2 : index
    %c1_39 = arith.constant 1 : index
    %67 = vector.load %arg8[%c0_37, %c2_38, %c1_39] : memref<2x18x18xf32, #tpu.memory_space<vmem>>, vector<1x16x16xf32>
    %68 = vector.shape_cast %67 : vector<1x16x16xf32> to vector<16x16xf32>
    %69 = vector.broadcast %66 : f32 to vector<16x16xf32>
    %70 = arith.mulf %68, %69 : vector<16x16xf32>
    %71 = arith.addf %63, %70 : vector<16x16xf32>
    %c0_i32_40 = arith.constant 0 : i32
    %72 = arith.addi %0, %c0_i32_40 : i32
    %73 = arith.index_cast %72 : i32 to index
    %c8 = arith.constant 8 : index
    %74 = memref.load %arg3[%73, %c8] : memref<4x9xf32, #tpu.memory_space<smem>>
    %c0_41 = arith.constant 0 : index
    %c2_42 = arith.constant 2 : index
    %c2_43 = arith.constant 2 : index
    %75 = vector.load %arg8[%c0_41, %c2_42, %c2_43] : memref<2x18x18xf32, #tpu.memory_space<vmem>>, vector<1x16x16xf32>
    %76 = vector.shape_cast %75 : vector<1x16x16xf32> to vector<16x16xf32>
    %77 = vector.broadcast %74 : f32 to vector<16x16xf32>
    %78 = arith.mulf %76, %77 : vector<16x16xf32>
    %79 = arith.addf %71, %78 : vector<16x16xf32>
    %c0_i32_44 = arith.constant 0 : i32
    %80 = arith.addi %0, %c0_i32_44 : i32
    %81 = arith.index_cast %80 : i32 to index
    %82 = memref.load %arg4[%81] : memref<4xf32, #tpu.memory_space<smem>>
    %83 = vector.broadcast %82 : f32 to vector<16x16xf32>
    %84 = arith.addf %79, %83 : vector<16x16xf32>
    %85 = arith.negf %84 : vector<16x16xf32>
    %86 = math.exp %85 : vector<16x16xf32>
    %cst_45 = arith.constant 1.000000e+00 : f32
    %87 = vector.broadcast %cst_45 : f32 to vector<16x16xf32>
    %88 = arith.addf %87, %86 : vector<16x16xf32>
    %89 = arith.divf %87, %88 : vector<16x16xf32>
    %90 = arith.mulf %84, %89 : vector<16x16xf32>
    %cst_46 = arith.constant 0.000000e+00 : f32
    %91 = vector.broadcast %cst_46 : f32 to vector<16x16xf32>
    %c1_i32 = arith.constant 1 : i32
    %92 = arith.addi %0, %c1_i32 : i32
    %93 = arith.index_cast %92 : i32 to index
    %c0_47 = arith.constant 0 : index
    %94 = memref.load %arg3[%93, %c0_47] : memref<4x9xf32, #tpu.memory_space<smem>>
    %c1_48 = arith.constant 1 : index
    %c0_49 = arith.constant 0 : index
    %c0_50 = arith.constant 0 : index
    %95 = vector.load %arg8[%c1_48, %c0_49, %c0_50] : memref<2x18x18xf32, #tpu.memory_space<vmem>>, vector<1x16x16xf32>
    %96 = vector.shape_cast %95 : vector<1x16x16xf32> to vector<16x16xf32>
    %97 = vector.broadcast %94 : f32 to vector<16x16xf32>
    %98 = arith.mulf %96, %97 : vector<16x16xf32>
    %99 = arith.addf %91, %98 : vector<16x16xf32>
    %c1_i32_51 = arith.constant 1 : i32
    %100 = arith.addi %0, %c1_i32_51 : i32
    %101 = arith.index_cast %100 : i32 to index
    %c1_52 = arith.constant 1 : index
    %102 = memref.load %arg3[%101, %c1_52] : memref<4x9xf32, #tpu.memory_space<smem>>
    %c1_53 = arith.constant 1 : index
    %c0_54 = arith.constant 0 : index
    %c1_55 = arith.constant 1 : index
    %103 = vector.load %arg8[%c1_53, %c0_54, %c1_55] : memref<2x18x18xf32, #tpu.memory_space<vmem>>, vector<1x16x16xf32>
    %104 = vector.shape_cast %103 : vector<1x16x16xf32> to vector<16x16xf32>
    %105 = vector.broadcast %102 : f32 to vector<16x16xf32>
    %106 = arith.mulf %104, %105 : vector<16x16xf32>
    %107 = arith.addf %99, %106 : vector<16x16xf32>
    %c1_i32_56 = arith.constant 1 : i32
    %108 = arith.addi %0, %c1_i32_56 : i32
    %109 = arith.index_cast %108 : i32 to index
    %c2_57 = arith.constant 2 : index
    %110 = memref.load %arg3[%109, %c2_57] : memref<4x9xf32, #tpu.memory_space<smem>>
    %c1_58 = arith.constant 1 : index
    %c0_59 = arith.constant 0 : index
    %c2_60 = arith.constant 2 : index
    %111 = vector.load %arg8[%c1_58, %c0_59, %c2_60] : memref<2x18x18xf32, #tpu.memory_space<vmem>>, vector<1x16x16xf32>
    %112 = vector.shape_cast %111 : vector<1x16x16xf32> to vector<16x16xf32>
    %113 = vector.broadcast %110 : f32 to vector<16x16xf32>
    %114 = arith.mulf %112, %113 : vector<16x16xf32>
    %115 = arith.addf %107, %114 : vector<16x16xf32>
    %c1_i32_61 = arith.constant 1 : i32
    %116 = arith.addi %0, %c1_i32_61 : i32
    %117 = arith.index_cast %116 : i32 to index
    %c3_62 = arith.constant 3 : index
    %118 = memref.load %arg3[%117, %c3_62] : memref<4x9xf32, #tpu.memory_space<smem>>
    %c1_63 = arith.constant 1 : index
    %c1_64 = arith.constant 1 : index
    %c0_65 = arith.constant 0 : index
    %119 = vector.load %arg8[%c1_63, %c1_64, %c0_65] : memref<2x18x18xf32, #tpu.memory_space<vmem>>, vector<1x16x16xf32>
    %120 = vector.shape_cast %119 : vector<1x16x16xf32> to vector<16x16xf32>
    %121 = vector.broadcast %118 : f32 to vector<16x16xf32>
    %122 = arith.mulf %120, %121 : vector<16x16xf32>
    %123 = arith.addf %115, %122 : vector<16x16xf32>
    %c1_i32_66 = arith.constant 1 : i32
    %124 = arith.addi %0, %c1_i32_66 : i32
    %125 = arith.index_cast %124 : i32 to index
    %c4_67 = arith.constant 4 : index
    %126 = memref.load %arg3[%125, %c4_67] : memref<4x9xf32, #tpu.memory_space<smem>>
    %c1_68 = arith.constant 1 : index
    %c1_69 = arith.constant 1 : index
    %c1_70 = arith.constant 1 : index
    %127 = vector.load %arg8[%c1_68, %c1_69, %c1_70] : memref<2x18x18xf32, #tpu.memory_space<vmem>>, vector<1x16x16xf32>
    %128 = vector.shape_cast %127 : vector<1x16x16xf32> to vector<16x16xf32>
    %129 = vector.broadcast %126 : f32 to vector<16x16xf32>
    %130 = arith.mulf %128, %129 : vector<16x16xf32>
    %131 = arith.addf %123, %130 : vector<16x16xf32>
    %c1_i32_71 = arith.constant 1 : i32
    %132 = arith.addi %0, %c1_i32_71 : i32
    %133 = arith.index_cast %132 : i32 to index
    %c5_72 = arith.constant 5 : index
    %134 = memref.load %arg3[%133, %c5_72] : memref<4x9xf32, #tpu.memory_space<smem>>
    %c1_73 = arith.constant 1 : index
    %c1_74 = arith.constant 1 : index
    %c2_75 = arith.constant 2 : index
    %135 = vector.load %arg8[%c1_73, %c1_74, %c2_75] : memref<2x18x18xf32, #tpu.memory_space<vmem>>, vector<1x16x16xf32>
    %136 = vector.shape_cast %135 : vector<1x16x16xf32> to vector<16x16xf32>
    %137 = vector.broadcast %134 : f32 to vector<16x16xf32>
    %138 = arith.mulf %136, %137 : vector<16x16xf32>
    %139 = arith.addf %131, %138 : vector<16x16xf32>
    %c1_i32_76 = arith.constant 1 : i32
    %140 = arith.addi %0, %c1_i32_76 : i32
    %141 = arith.index_cast %140 : i32 to index
    %c6_77 = arith.constant 6 : index
    %142 = memref.load %arg3[%141, %c6_77] : memref<4x9xf32, #tpu.memory_space<smem>>
    %c1_78 = arith.constant 1 : index
    %c2_79 = arith.constant 2 : index
    %c0_80 = arith.constant 0 : index
    %143 = vector.load %arg8[%c1_78, %c2_79, %c0_80] : memref<2x18x18xf32, #tpu.memory_space<vmem>>, vector<1x16x16xf32>
    %144 = vector.shape_cast %143 : vector<1x16x16xf32> to vector<16x16xf32>
    %145 = vector.broadcast %142 : f32 to vector<16x16xf32>
    %146 = arith.mulf %144, %145 : vector<16x16xf32>
    %147 = arith.addf %139, %146 : vector<16x16xf32>
    %c1_i32_81 = arith.constant 1 : i32
    %148 = arith.addi %0, %c1_i32_81 : i32
    %149 = arith.index_cast %148 : i32 to index
    %c7_82 = arith.constant 7 : index
    %150 = memref.load %arg3[%149, %c7_82] : memref<4x9xf32, #tpu.memory_space<smem>>
    %c1_83 = arith.constant 1 : index
    %c2_84 = arith.constant 2 : index
    %c1_85 = arith.constant 1 : index
    %151 = vector.load %arg8[%c1_83, %c2_84, %c1_85] : memref<2x18x18xf32, #tpu.memory_space<vmem>>, vector<1x16x16xf32>
    %152 = vector.shape_cast %151 : vector<1x16x16xf32> to vector<16x16xf32>
    %153 = vector.broadcast %150 : f32 to vector<16x16xf32>
    %154 = arith.mulf %152, %153 : vector<16x16xf32>
    %155 = arith.addf %147, %154 : vector<16x16xf32>
    %c1_i32_86 = arith.constant 1 : i32
    %156 = arith.addi %0, %c1_i32_86 : i32
    %157 = arith.index_cast %156 : i32 to index
    %c8_87 = arith.constant 8 : index
    %158 = memref.load %arg3[%157, %c8_87] : memref<4x9xf32, #tpu.memory_space<smem>>
    %c1_88 = arith.constant 1 : index
    %c2_89 = arith.constant 2 : index
    %c2_90 = arith.constant 2 : index
    %159 = vector.load %arg8[%c1_88, %c2_89, %c2_90] : memref<2x18x18xf32, #tpu.memory_space<vmem>>, vector<1x16x16xf32>
    %160 = vector.shape_cast %159 : vector<1x16x16xf32> to vector<16x16xf32>
    %161 = vector.broadcast %158 : f32 to vector<16x16xf32>
    %162 = arith.mulf %160, %161 : vector<16x16xf32>
    %163 = arith.addf %155, %162 : vector<16x16xf32>
    %c1_i32_91 = arith.constant 1 : i32
    %164 = arith.addi %0, %c1_i32_91 : i32
    %165 = arith.index_cast %164 : i32 to index
    %166 = memref.load %arg4[%165] : memref<4xf32, #tpu.memory_space<smem>>
    %167 = vector.broadcast %166 : f32 to vector<16x16xf32>
    %168 = arith.addf %163, %167 : vector<16x16xf32>
    %169 = arith.negf %168 : vector<16x16xf32>
    %170 = math.exp %169 : vector<16x16xf32>
    %cst_92 = arith.constant 1.000000e+00 : f32
    %171 = vector.broadcast %cst_92 : f32 to vector<16x16xf32>
    %172 = arith.addf %171, %170 : vector<16x16xf32>
    %173 = arith.divf %171, %172 : vector<16x16xf32>
    %174 = arith.mulf %168, %173 : vector<16x16xf32>
    %c0_93 = arith.constant 0 : index
    %c0_94 = arith.constant 0 : index
    %c0_95 = arith.constant 0 : index
    %c0_96 = arith.constant 0 : index
    %175 = vector.load %arg7[%c0_93, %c0_94, %c0_95, %c0_96] : memref<1x8x16x16xf32, #tpu.memory_space<vmem>>, vector<1x1x16x16xf32>
    %176 = vector.shape_cast %175 : vector<1x1x16x16xf32> to vector<16x16xf32>
    %c0_i32_97 = arith.constant 0 : i32
    %177 = arith.addi %0, %c0_i32_97 : i32
    %178 = arith.index_cast %177 : i32 to index
    %c0_98 = arith.constant 0 : index
    %179 = memref.load %arg5[%178, %c0_98] : memref<4x8xf32, #tpu.memory_space<smem>>
    %180 = vector.broadcast %179 : f32 to vector<16x16xf32>
    %181 = arith.mulf %180, %90 : vector<16x16xf32>
    %182 = arith.addf %176, %181 : vector<16x16xf32>
    %c1_i32_99 = arith.constant 1 : i32
    %183 = arith.addi %0, %c1_i32_99 : i32
    %184 = arith.index_cast %183 : i32 to index
    %c0_100 = arith.constant 0 : index
    %185 = memref.load %arg5[%184, %c0_100] : memref<4x8xf32, #tpu.memory_space<smem>>
    %186 = vector.broadcast %185 : f32 to vector<16x16xf32>
    %187 = arith.mulf %186, %174 : vector<16x16xf32>
    %188 = arith.addf %182, %187 : vector<16x16xf32>
    %c0_101 = arith.constant 0 : index
    %c0_102 = arith.constant 0 : index
    %c0_103 = arith.constant 0 : index
    %c0_104 = arith.constant 0 : index
    %189 = vector.load %arg7[%c0_101, %c0_102, %c0_103, %c0_104] : memref<1x8x16x16xf32, #tpu.memory_space<vmem>>, vector<1x1x16x16xf32>
    %190 = vector.shape_cast %189 : vector<1x1x16x16xf32> to vector<16x16xf32>
    %191 = vector.shape_cast %188 : vector<16x16xf32> to vector<1x1x16x16xf32>
    tpu.vector_store %arg7[%c0_101, %c0_102, %c0_103, %c0_104], %191 {strides = array<i32>} : memref<1x8x16x16xf32, #tpu.memory_space<vmem>>, vector<1x1x16x16xf32>,
    %c0_105 = arith.constant 0 : index
    %c1_106 = arith.constant 1 : index
    %c0_107 = arith.constant 0 : index
    %c0_108 = arith.constant 0 : index
    %192 = vector.load %arg7[%c0_105, %c1_106, %c0_107, %c0_108] : memref<1x8x16x16xf32, #tpu.memory_space<vmem>>, vector<1x1x16x16xf32>
    %193 = vector.shape_cast %192 : vector<1x1x16x16xf32> to vector<16x16xf32>
    %c0_i32_109 = arith.constant 0 : i32
    %194 = arith.addi %0, %c0_i32_109 : i32
    %195 = arith.index_cast %194 : i32 to index
    %c1_110 = arith.constant 1 : index
    %196 = memref.load %arg5[%195, %c1_110] : memref<4x8xf32, #tpu.memory_space<smem>>
    %197 = vector.broadcast %196 : f32 to vector<16x16xf32>
    %198 = arith.mulf %197, %90 : vector<16x16xf32>
    %199 = arith.addf %193, %198 : vector<16x16xf32>
    %c1_i32_111 = arith.constant 1 : i32
    %200 = arith.addi %0, %c1_i32_111 : i32
    %201 = arith.index_cast %200 : i32 to index
    %c1_112 = arith.constant 1 : index
    %202 = memref.load %arg5[%201, %c1_112] : memref<4x8xf32, #tpu.memory_space<smem>>
    %203 = vector.broadcast %202 : f32 to vector<16x16xf32>
    %204 = arith.mulf %203, %174 : vector<16x16xf32>
    %205 = arith.addf %199, %204 : vector<16x16xf32>
    %c0_113 = arith.constant 0 : index
    %c1_114 = arith.constant 1 : index
    %c0_115 = arith.constant 0 : index
    %c0_116 = arith.constant 0 : index
    %206 = vector.load %arg7[%c0_113, %c1_114, %c0_115, %c0_116] : memref<1x8x16x16xf32, #tpu.memory_space<vmem>>, vector<1x1x16x16xf32>
    %207 = vector.shape_cast %206 : vector<1x1x16x16xf32> to vector<16x16xf32>
    %208 = vector.shape_cast %205 : vector<16x16xf32> to vector<1x1x16x16xf32>
    tpu.vector_store %arg7[%c0_113, %c1_114, %c0_115, %c0_116], %208 {strides = array<i32>} : memref<1x8x16x16xf32, #tpu.memory_space<vmem>>, vector<1x1x16x16xf32>,
    %c0_117 = arith.constant 0 : index
    %c2_118 = arith.constant 2 : index
    %c0_119 = arith.constant 0 : index
    %c0_120 = arith.constant 0 : index
    %209 = vector.load %arg7[%c0_117, %c2_118, %c0_119, %c0_120] : memref<1x8x16x16xf32, #tpu.memory_space<vmem>>, vector<1x1x16x16xf32>
    %210 = vector.shape_cast %209 : vector<1x1x16x16xf32> to vector<16x16xf32>
    %c0_i32_121 = arith.constant 0 : i32
    %211 = arith.addi %0, %c0_i32_121 : i32
    %212 = arith.index_cast %211 : i32 to index
    %c2_122 = arith.constant 2 : index
    %213 = memref.load %arg5[%212, %c2_122] : memref<4x8xf32, #tpu.memory_space<smem>>
    %214 = vector.broadcast %213 : f32 to vector<16x16xf32>
    %215 = arith.mulf %214, %90 : vector<16x16xf32>
    %216 = arith.addf %210, %215 : vector<16x16xf32>
    %c1_i32_123 = arith.constant 1 : i32
    %217 = arith.addi %0, %c1_i32_123 : i32
    %218 = arith.index_cast %217 : i32 to index
    %c2_124 = arith.constant 2 : index
    %219 = memref.load %arg5[%218, %c2_124] : memref<4x8xf32, #tpu.memory_space<smem>>
    %220 = vector.broadcast %219 : f32 to vector<16x16xf32>
    %221 = arith.mulf %220, %174 : vector<16x16xf32>
    %222 = arith.addf %216, %221 : vector<16x16xf32>
    %c0_125 = arith.constant 0 : index
    %c2_126 = arith.constant 2 : index
    %c0_127 = arith.constant 0 : index
    %c0_128 = arith.constant 0 : index
    %223 = vector.load %arg7[%c0_125, %c2_126, %c0_127, %c0_128] : memref<1x8x16x16xf32, #tpu.memory_space<vmem>>, vector<1x1x16x16xf32>
    %224 = vector.shape_cast %223 : vector<1x1x16x16xf32> to vector<16x16xf32>
    %225 = vector.shape_cast %222 : vector<16x16xf32> to vector<1x1x16x16xf32>
    tpu.vector_store %arg7[%c0_125, %c2_126, %c0_127, %c0_128], %225 {strides = array<i32>} : memref<1x8x16x16xf32, #tpu.memory_space<vmem>>, vector<1x1x16x16xf32>,
    %c0_129 = arith.constant 0 : index
    %c3_130 = arith.constant 3 : index
    %c0_131 = arith.constant 0 : index
    %c0_132 = arith.constant 0 : index
    %226 = vector.load %arg7[%c0_129, %c3_130, %c0_131, %c0_132] : memref<1x8x16x16xf32, #tpu.memory_space<vmem>>, vector<1x1x16x16xf32>
    %227 = vector.shape_cast %226 : vector<1x1x16x16xf32> to vector<16x16xf32>
    %c0_i32_133 = arith.constant 0 : i32
    %228 = arith.addi %0, %c0_i32_133 : i32
    %229 = arith.index_cast %228 : i32 to index
    %c3_134 = arith.constant 3 : index
    %230 = memref.load %arg5[%229, %c3_134] : memref<4x8xf32, #tpu.memory_space<smem>>
    %231 = vector.broadcast %230 : f32 to vector<16x16xf32>
    %232 = arith.mulf %231, %90 : vector<16x16xf32>
    %233 = arith.addf %227, %232 : vector<16x16xf32>
    %c1_i32_135 = arith.constant 1 : i32
    %234 = arith.addi %0, %c1_i32_135 : i32
    %235 = arith.index_cast %234 : i32 to index
    %c3_136 = arith.constant 3 : index
    %236 = memref.load %arg5[%235, %c3_136] : memref<4x8xf32, #tpu.memory_space<smem>>
    %237 = vector.broadcast %236 : f32 to vector<16x16xf32>
    %238 = arith.mulf %237, %174 : vector<16x16xf32>
    %239 = arith.addf %233, %238 : vector<16x16xf32>
    %c0_137 = arith.constant 0 : index
    %c3_138 = arith.constant 3 : index
    %c0_139 = arith.constant 0 : index
    %c0_140 = arith.constant 0 : index
    %240 = vector.load %arg7[%c0_137, %c3_138, %c0_139, %c0_140] : memref<1x8x16x16xf32, #tpu.memory_space<vmem>>, vector<1x1x16x16xf32>
    %241 = vector.shape_cast %240 : vector<1x1x16x16xf32> to vector<16x16xf32>
    %242 = vector.shape_cast %239 : vector<16x16xf32> to vector<1x1x16x16xf32>
    tpu.vector_store %arg7[%c0_137, %c3_138, %c0_139, %c0_140], %242 {strides = array<i32>} : memref<1x8x16x16xf32, #tpu.memory_space<vmem>>, vector<1x1x16x16xf32>,
    %c0_141 = arith.constant 0 : index
    %c4_142 = arith.constant 4 : index
    %c0_143 = arith.constant 0 : index
    %c0_144 = arith.constant 0 : index
    %243 = vector.load %arg7[%c0_141, %c4_142, %c0_143, %c0_144] : memref<1x8x16x16xf32, #tpu.memory_space<vmem>>, vector<1x1x16x16xf32>
    %244 = vector.shape_cast %243 : vector<1x1x16x16xf32> to vector<16x16xf32>
    %c0_i32_145 = arith.constant 0 : i32
    %245 = arith.addi %0, %c0_i32_145 : i32
    %246 = arith.index_cast %245 : i32 to index
    %c4_146 = arith.constant 4 : index
    %247 = memref.load %arg5[%246, %c4_146] : memref<4x8xf32, #tpu.memory_space<smem>>
    %248 = vector.broadcast %247 : f32 to vector<16x16xf32>
    %249 = arith.mulf %248, %90 : vector<16x16xf32>
    %250 = arith.addf %244, %249 : vector<16x16xf32>
    %c1_i32_147 = arith.constant 1 : i32
    %251 = arith.addi %0, %c1_i32_147 : i32
    %252 = arith.index_cast %251 : i32 to index
    %c4_148 = arith.constant 4 : index
    %253 = memref.load %arg5[%252, %c4_148] : memref<4x8xf32, #tpu.memory_space<smem>>
    %254 = vector.broadcast %253 : f32 to vector<16x16xf32>
    %255 = arith.mulf %254, %174 : vector<16x16xf32>
    %256 = arith.addf %250, %255 : vector<16x16xf32>
    %c0_149 = arith.constant 0 : index
    %c4_150 = arith.constant 4 : index
    %c0_151 = arith.constant 0 : index
    %c0_152 = arith.constant 0 : index
    %257 = vector.load %arg7[%c0_149, %c4_150, %c0_151, %c0_152] : memref<1x8x16x16xf32, #tpu.memory_space<vmem>>, vector<1x1x16x16xf32>
    %258 = vector.shape_cast %257 : vector<1x1x16x16xf32> to vector<16x16xf32>
    %259 = vector.shape_cast %256 : vector<16x16xf32> to vector<1x1x16x16xf32>
    tpu.vector_store %arg7[%c0_149, %c4_150, %c0_151, %c0_152], %259 {strides = array<i32>} : memref<1x8x16x16xf32, #tpu.memory_space<vmem>>, vector<1x1x16x16xf32>,
    %c0_153 = arith.constant 0 : index
    %c5_154 = arith.constant 5 : index
    %c0_155 = arith.constant 0 : index
    %c0_156 = arith.constant 0 : index
    %260 = vector.load %arg7[%c0_153, %c5_154, %c0_155, %c0_156] : memref<1x8x16x16xf32, #tpu.memory_space<vmem>>, vector<1x1x16x16xf32>
    %261 = vector.shape_cast %260 : vector<1x1x16x16xf32> to vector<16x16xf32>
    %c0_i32_157 = arith.constant 0 : i32
    %262 = arith.addi %0, %c0_i32_157 : i32
    %263 = arith.index_cast %262 : i32 to index
    %c5_158 = arith.constant 5 : index
    %264 = memref.load %arg5[%263, %c5_158] : memref<4x8xf32, #tpu.memory_space<smem>>
    %265 = vector.broadcast %264 : f32 to vector<16x16xf32>
    %266 = arith.mulf %265, %90 : vector<16x16xf32>
    %267 = arith.addf %261, %266 : vector<16x16xf32>
    %c1_i32_159 = arith.constant 1 : i32
    %268 = arith.addi %0, %c1_i32_159 : i32
    %269 = arith.index_cast %268 : i32 to index
    %c5_160 = arith.constant 5 : index
    %270 = memref.load %arg5[%269, %c5_160] : memref<4x8xf32, #tpu.memory_space<smem>>
    %271 = vector.broadcast %270 : f32 to vector<16x16xf32>
    %272 = arith.mulf %271, %174 : vector<16x16xf32>
    %273 = arith.addf %267, %272 : vector<16x16xf32>
    %c0_161 = arith.constant 0 : index
    %c5_162 = arith.constant 5 : index
    %c0_163 = arith.constant 0 : index
    %c0_164 = arith.constant 0 : index
    %274 = vector.load %arg7[%c0_161, %c5_162, %c0_163, %c0_164] : memref<1x8x16x16xf32, #tpu.memory_space<vmem>>, vector<1x1x16x16xf32>
    %275 = vector.shape_cast %274 : vector<1x1x16x16xf32> to vector<16x16xf32>
    %276 = vector.shape_cast %273 : vector<16x16xf32> to vector<1x1x16x16xf32>
    tpu.vector_store %arg7[%c0_161, %c5_162, %c0_163, %c0_164], %276 {strides = array<i32>} : memref<1x8x16x16xf32, #tpu.memory_space<vmem>>, vector<1x1x16x16xf32>,
    %c0_165 = arith.constant 0 : index
    %c6_166 = arith.constant 6 : index
    %c0_167 = arith.constant 0 : index
    %c0_168 = arith.constant 0 : index
    %277 = vector.load %arg7[%c0_165, %c6_166, %c0_167, %c0_168] : memref<1x8x16x16xf32, #tpu.memory_space<vmem>>, vector<1x1x16x16xf32>
    %278 = vector.shape_cast %277 : vector<1x1x16x16xf32> to vector<16x16xf32>
    %c0_i32_169 = arith.constant 0 : i32
    %279 = arith.addi %0, %c0_i32_169 : i32
    %280 = arith.index_cast %279 : i32 to index
    %c6_170 = arith.constant 6 : index
    %281 = memref.load %arg5[%280, %c6_170] : memref<4x8xf32, #tpu.memory_space<smem>>
    %282 = vector.broadcast %281 : f32 to vector<16x16xf32>
    %283 = arith.mulf %282, %90 : vector<16x16xf32>
    %284 = arith.addf %278, %283 : vector<16x16xf32>
    %c1_i32_171 = arith.constant 1 : i32
    %285 = arith.addi %0, %c1_i32_171 : i32
    %286 = arith.index_cast %285 : i32 to index
    %c6_172 = arith.constant 6 : index
    %287 = memref.load %arg5[%286, %c6_172] : memref<4x8xf32, #tpu.memory_space<smem>>
    %288 = vector.broadcast %287 : f32 to vector<16x16xf32>
    %289 = arith.mulf %288, %174 : vector<16x16xf32>
    %290 = arith.addf %284, %289 : vector<16x16xf32>
    %c0_173 = arith.constant 0 : index
    %c6_174 = arith.constant 6 : index
    %c0_175 = arith.constant 0 : index
    %c0_176 = arith.constant 0 : index
    %291 = vector.load %arg7[%c0_173, %c6_174, %c0_175, %c0_176] : memref<1x8x16x16xf32, #tpu.memory_space<vmem>>, vector<1x1x16x16xf32>
    %292 = vector.shape_cast %291 : vector<1x1x16x16xf32> to vector<16x16xf32>
    %293 = vector.shape_cast %290 : vector<16x16xf32> to vector<1x1x16x16xf32>
    tpu.vector_store %arg7[%c0_173, %c6_174, %c0_175, %c0_176], %293 {strides = array<i32>} : memref<1x8x16x16xf32, #tpu.memory_space<vmem>>, vector<1x1x16x16xf32>,
    %c0_177 = arith.constant 0 : index
    %c7_178 = arith.constant 7 : index
    %c0_179 = arith.constant 0 : index
    %c0_180 = arith.constant 0 : index
    %294 = vector.load %arg7[%c0_177, %c7_178, %c0_179, %c0_180] : memref<1x8x16x16xf32, #tpu.memory_space<vmem>>, vector<1x1x16x16xf32>
    %295 = vector.shape_cast %294 : vector<1x1x16x16xf32> to vector<16x16xf32>
    %c0_i32_181 = arith.constant 0 : i32
    %296 = arith.addi %0, %c0_i32_181 : i32
    %297 = arith.index_cast %296 : i32 to index
    %c7_182 = arith.constant 7 : index
    %298 = memref.load %arg5[%297, %c7_182] : memref<4x8xf32, #tpu.memory_space<smem>>
    %299 = vector.broadcast %298 : f32 to vector<16x16xf32>
    %300 = arith.mulf %299, %90 : vector<16x16xf32>
    %301 = arith.addf %295, %300 : vector<16x16xf32>
    %c1_i32_183 = arith.constant 1 : i32
    %302 = arith.addi %0, %c1_i32_183 : i32
    %303 = arith.index_cast %302 : i32 to index
    %c7_184 = arith.constant 7 : index
    %304 = memref.load %arg5[%303, %c7_184] : memref<4x8xf32, #tpu.memory_space<smem>>
    %305 = vector.broadcast %304 : f32 to vector<16x16xf32>
    %306 = arith.mulf %305, %174 : vector<16x16xf32>
    %307 = arith.addf %301, %306 : vector<16x16xf32>
    %c0_185 = arith.constant 0 : index
    %c7_186 = arith.constant 7 : index
    %c0_187 = arith.constant 0 : index
    %c0_188 = arith.constant 0 : index
    %308 = vector.load %arg7[%c0_185, %c7_186, %c0_187, %c0_188] : memref<1x8x16x16xf32, #tpu.memory_space<vmem>>, vector<1x1x16x16xf32>
    %309 = vector.shape_cast %308 : vector<1x1x16x16xf32> to vector<16x16xf32>
    %310 = vector.shape_cast %307 : vector<16x16xf32> to vector<1x1x16x16xf32>
    tpu.vector_store %arg7[%c0_185, %c7_186, %c0_187, %c0_188], %310 {strides = array<i32>} : memref<1x8x16x16xf32, #tpu.memory_space<vmem>>, vector<1x1x16x16xf32>,
    %c1_i32_189 = arith.constant 1 : i32
    %311 = arith.cmpi eq, %arg1, %c1_i32_189 : i32
    %312 = arith.extui %311 : i1 to i32
    %c0_i32_190 = arith.constant 0 : i32
    %313 = arith.cmpi ne, %312, %c0_i32_190 : i32
    scf.if %313 {
      %c0_191 = arith.constant 0 : index
      %c0_192 = arith.constant 0 : index
      %c0_193 = arith.constant 0 : index
      %c0_194 = arith.constant 0 : index
      %314 = vector.load %arg7[%c0_191, %c0_192, %c0_193, %c0_194] : memref<1x8x16x16xf32, #tpu.memory_space<vmem>>, vector<1x1x16x16xf32>
      %315 = vector.shape_cast %314 : vector<1x1x16x16xf32> to vector<16x16xf32>
      %c0_195 = arith.constant 0 : index
      %316 = memref.load %arg6[%c0_195] : memref<8xf32, #tpu.memory_space<smem>>
      %317 = vector.broadcast %316 : f32 to vector<16x16xf32>
      %318 = arith.addf %315, %317 : vector<16x16xf32>
      %319 = arith.negf %318 : vector<16x16xf32>
      %320 = math.exp %319 : vector<16x16xf32>
      %cst_196 = arith.constant 1.000000e+00 : f32
      %321 = vector.broadcast %cst_196 : f32 to vector<16x16xf32>
      %322 = arith.addf %321, %320 : vector<16x16xf32>
      %323 = arith.divf %321, %322 : vector<16x16xf32>
      %324 = arith.mulf %318, %323 : vector<16x16xf32>
      %c0_197 = arith.constant 0 : index
      %c0_198 = arith.constant 0 : index
      %c0_199 = arith.constant 0 : index
      %c0_200 = arith.constant 0 : index
      %325 = vector.load %arg7[%c0_197, %c0_198, %c0_199, %c0_200] : memref<1x8x16x16xf32, #tpu.memory_space<vmem>>, vector<1x1x16x16xf32>
      %326 = vector.shape_cast %325 : vector<1x1x16x16xf32> to vector<16x16xf32>
      %327 = vector.shape_cast %324 : vector<16x16xf32> to vector<1x1x16x16xf32>
      tpu.vector_store %arg7[%c0_197, %c0_198, %c0_199, %c0_200], %327 {strides = array<i32>} : memref<1x8x16x16xf32, #tpu.memory_space<vmem>>, vector<1x1x16x16xf32>,
      %c0_201 = arith.constant 0 : index
      %c1_202 = arith.constant 1 : index
      %c0_203 = arith.constant 0 : index
      %c0_204 = arith.constant 0 : index
      %328 = vector.load %arg7[%c0_201, %c1_202, %c0_203, %c0_204] : memref<1x8x16x16xf32, #tpu.memory_space<vmem>>, vector<1x1x16x16xf32>
      %329 = vector.shape_cast %328 : vector<1x1x16x16xf32> to vector<16x16xf32>
      %c1_205 = arith.constant 1 : index
      %330 = memref.load %arg6[%c1_205] : memref<8xf32, #tpu.memory_space<smem>>
      %331 = vector.broadcast %330 : f32 to vector<16x16xf32>
      %332 = arith.addf %329, %331 : vector<16x16xf32>
      %333 = arith.negf %332 : vector<16x16xf32>
      %334 = math.exp %333 : vector<16x16xf32>
      %cst_206 = arith.constant 1.000000e+00 : f32
      %335 = vector.broadcast %cst_206 : f32 to vector<16x16xf32>
      %336 = arith.addf %335, %334 : vector<16x16xf32>
      %337 = arith.divf %335, %336 : vector<16x16xf32>
      %338 = arith.mulf %332, %337 : vector<16x16xf32>
      %c0_207 = arith.constant 0 : index
      %c1_208 = arith.constant 1 : index
      %c0_209 = arith.constant 0 : index
      %c0_210 = arith.constant 0 : index
      %339 = vector.load %arg7[%c0_207, %c1_208, %c0_209, %c0_210] : memref<1x8x16x16xf32, #tpu.memory_space<vmem>>, vector<1x1x16x16xf32>
      %340 = vector.shape_cast %339 : vector<1x1x16x16xf32> to vector<16x16xf32>
      %341 = vector.shape_cast %338 : vector<16x16xf32> to vector<1x1x16x16xf32>
      tpu.vector_store %arg7[%c0_207, %c1_208, %c0_209, %c0_210], %341 {strides = array<i32>} : memref<1x8x16x16xf32, #tpu.memory_space<vmem>>, vector<1x1x16x16xf32>,
      %c0_211 = arith.constant 0 : index
      %c2_212 = arith.constant 2 : index
      %c0_213 = arith.constant 0 : index
      %c0_214 = arith.constant 0 : index
      %342 = vector.load %arg7[%c0_211, %c2_212, %c0_213, %c0_214] : memref<1x8x16x16xf32, #tpu.memory_space<vmem>>, vector<1x1x16x16xf32>
      %343 = vector.shape_cast %342 : vector<1x1x16x16xf32> to vector<16x16xf32>
      %c2_215 = arith.constant 2 : index
      %344 = memref.load %arg6[%c2_215] : memref<8xf32, #tpu.memory_space<smem>>
      %345 = vector.broadcast %344 : f32 to vector<16x16xf32>
      %346 = arith.addf %343, %345 : vector<16x16xf32>
      %347 = arith.negf %346 : vector<16x16xf32>
      %348 = math.exp %347 : vector<16x16xf32>
      %cst_216 = arith.constant 1.000000e+00 : f32
      %349 = vector.broadcast %cst_216 : f32 to vector<16x16xf32>
      %350 = arith.addf %349, %348 : vector<16x16xf32>
      %351 = arith.divf %349, %350 : vector<16x16xf32>
      %352 = arith.mulf %346, %351 : vector<16x16xf32>
      %c0_217 = arith.constant 0 : index
      %c2_218 = arith.constant 2 : index
      %c0_219 = arith.constant 0 : index
      %c0_220 = arith.constant 0 : index
      %353 = vector.load %arg7[%c0_217, %c2_218, %c0_219, %c0_220] : memref<1x8x16x16xf32, #tpu.memory_space<vmem>>, vector<1x1x16x16xf32>
      %354 = vector.shape_cast %353 : vector<1x1x16x16xf32> to vector<16x16xf32>
      %355 = vector.shape_cast %352 : vector<16x16xf32> to vector<1x1x16x16xf32>
      tpu.vector_store %arg7[%c0_217, %c2_218, %c0_219, %c0_220], %355 {strides = array<i32>} : memref<1x8x16x16xf32, #tpu.memory_space<vmem>>, vector<1x1x16x16xf32>,
      %c0_221 = arith.constant 0 : index
      %c3_222 = arith.constant 3 : index
      %c0_223 = arith.constant 0 : index
      %c0_224 = arith.constant 0 : index
      %356 = vector.load %arg7[%c0_221, %c3_222, %c0_223, %c0_224] : memref<1x8x16x16xf32, #tpu.memory_space<vmem>>, vector<1x1x16x16xf32>
      %357 = vector.shape_cast %356 : vector<1x1x16x16xf32> to vector<16x16xf32>
      %c3_225 = arith.constant 3 : index
      %358 = memref.load %arg6[%c3_225] : memref<8xf32, #tpu.memory_space<smem>>
      %359 = vector.broadcast %358 : f32 to vector<16x16xf32>
      %360 = arith.addf %357, %359 : vector<16x16xf32>
      %361 = arith.negf %360 : vector<16x16xf32>
      %362 = math.exp %361 : vector<16x16xf32>
      %cst_226 = arith.constant 1.000000e+00 : f32
      %363 = vector.broadcast %cst_226 : f32 to vector<16x16xf32>
      %364 = arith.addf %363, %362 : vector<16x16xf32>
      %365 = arith.divf %363, %364 : vector<16x16xf32>
      %366 = arith.mulf %360, %365 : vector<16x16xf32>
      %c0_227 = arith.constant 0 : index
      %c3_228 = arith.constant 3 : index
      %c0_229 = arith.constant 0 : index
      %c0_230 = arith.constant 0 : index
      %367 = vector.load %arg7[%c0_227, %c3_228, %c0_229, %c0_230] : memref<1x8x16x16xf32, #tpu.memory_space<vmem>>, vector<1x1x16x16xf32>
      %368 = vector.shape_cast %367 : vector<1x1x16x16xf32> to vector<16x16xf32>
      %369 = vector.shape_cast %366 : vector<16x16xf32> to vector<1x1x16x16xf32>
      tpu.vector_store %arg7[%c0_227, %c3_228, %c0_229, %c0_230], %369 {strides = array<i32>} : memref<1x8x16x16xf32, #tpu.memory_space<vmem>>, vector<1x1x16x16xf32>,
      %c0_231 = arith.constant 0 : index
      %c4_232 = arith.constant 4 : index
      %c0_233 = arith.constant 0 : index
      %c0_234 = arith.constant 0 : index
      %370 = vector.load %arg7[%c0_231, %c4_232, %c0_233, %c0_234] : memref<1x8x16x16xf32, #tpu.memory_space<vmem>>, vector<1x1x16x16xf32>
      %371 = vector.shape_cast %370 : vector<1x1x16x16xf32> to vector<16x16xf32>
      %c4_235 = arith.constant 4 : index
      %372 = memref.load %arg6[%c4_235] : memref<8xf32, #tpu.memory_space<smem>>
      %373 = vector.broadcast %372 : f32 to vector<16x16xf32>
      %374 = arith.addf %371, %373 : vector<16x16xf32>
      %375 = arith.negf %374 : vector<16x16xf32>
      %376 = math.exp %375 : vector<16x16xf32>
      %cst_236 = arith.constant 1.000000e+00 : f32
      %377 = vector.broadcast %cst_236 : f32 to vector<16x16xf32>
      %378 = arith.addf %377, %376 : vector<16x16xf32>
      %379 = arith.divf %377, %378 : vector<16x16xf32>
      %380 = arith.mulf %374, %379 : vector<16x16xf32>
      %c0_237 = arith.constant 0 : index
      %c4_238 = arith.constant 4 : index
      %c0_239 = arith.constant 0 : index
      %c0_240 = arith.constant 0 : index
      %381 = vector.load %arg7[%c0_237, %c4_238, %c0_239, %c0_240] : memref<1x8x16x16xf32, #tpu.memory_space<vmem>>, vector<1x1x16x16xf32>
      %382 = vector.shape_cast %381 : vector<1x1x16x16xf32> to vector<16x16xf32>
      %383 = vector.shape_cast %380 : vector<16x16xf32> to vector<1x1x16x16xf32>
      tpu.vector_store %arg7[%c0_237, %c4_238, %c0_239, %c0_240], %383 {strides = array<i32>} : memref<1x8x16x16xf32, #tpu.memory_space<vmem>>, vector<1x1x16x16xf32>,
      %c0_241 = arith.constant 0 : index
      %c5_242 = arith.constant 5 : index
      %c0_243 = arith.constant 0 : index
      %c0_244 = arith.constant 0 : index
      %384 = vector.load %arg7[%c0_241, %c5_242, %c0_243, %c0_244] : memref<1x8x16x16xf32, #tpu.memory_space<vmem>>, vector<1x1x16x16xf32>
      %385 = vector.shape_cast %384 : vector<1x1x16x16xf32> to vector<16x16xf32>
      %c5_245 = arith.constant 5 : index
      %386 = memref.load %arg6[%c5_245] : memref<8xf32, #tpu.memory_space<smem>>
      %387 = vector.broadcast %386 : f32 to vector<16x16xf32>
      %388 = arith.addf %385, %387 : vector<16x16xf32>
      %389 = arith.negf %388 : vector<16x16xf32>
      %390 = math.exp %389 : vector<16x16xf32>
      %cst_246 = arith.constant 1.000000e+00 : f32
      %391 = vector.broadcast %cst_246 : f32 to vector<16x16xf32>
      %392 = arith.addf %391, %390 : vector<16x16xf32>
      %393 = arith.divf %391, %392 : vector<16x16xf32>
      %394 = arith.mulf %388, %393 : vector<16x16xf32>
      %c0_247 = arith.constant 0 : index
      %c5_248 = arith.constant 5 : index
      %c0_249 = arith.constant 0 : index
      %c0_250 = arith.constant 0 : index
      %395 = vector.load %arg7[%c0_247, %c5_248, %c0_249, %c0_250] : memref<1x8x16x16xf32, #tpu.memory_space<vmem>>, vector<1x1x16x16xf32>
      %396 = vector.shape_cast %395 : vector<1x1x16x16xf32> to vector<16x16xf32>
      %397 = vector.shape_cast %394 : vector<16x16xf32> to vector<1x1x16x16xf32>
      tpu.vector_store %arg7[%c0_247, %c5_248, %c0_249, %c0_250], %397 {strides = array<i32>} : memref<1x8x16x16xf32, #tpu.memory_space<vmem>>, vector<1x1x16x16xf32>,
      %c0_251 = arith.constant 0 : index
      %c6_252 = arith.constant 6 : index
      %c0_253 = arith.constant 0 : index
      %c0_254 = arith.constant 0 : index
      %398 = vector.load %arg7[%c0_251, %c6_252, %c0_253, %c0_254] : memref<1x8x16x16xf32, #tpu.memory_space<vmem>>, vector<1x1x16x16xf32>
      %399 = vector.shape_cast %398 : vector<1x1x16x16xf32> to vector<16x16xf32>
      %c6_255 = arith.constant 6 : index
      %400 = memref.load %arg6[%c6_255] : memref<8xf32, #tpu.memory_space<smem>>
      %401 = vector.broadcast %400 : f32 to vector<16x16xf32>
      %402 = arith.addf %399, %401 : vector<16x16xf32>
      %403 = arith.negf %402 : vector<16x16xf32>
      %404 = math.exp %403 : vector<16x16xf32>
      %cst_256 = arith.constant 1.000000e+00 : f32
      %405 = vector.broadcast %cst_256 : f32 to vector<16x16xf32>
      %406 = arith.addf %405, %404 : vector<16x16xf32>
      %407 = arith.divf %405, %406 : vector<16x16xf32>
      %408 = arith.mulf %402, %407 : vector<16x16xf32>
      %c0_257 = arith.constant 0 : index
      %c6_258 = arith.constant 6 : index
      %c0_259 = arith.constant 0 : index
      %c0_260 = arith.constant 0 : index
      %409 = vector.load %arg7[%c0_257, %c6_258, %c0_259, %c0_260] : memref<1x8x16x16xf32, #tpu.memory_space<vmem>>, vector<1x1x16x16xf32>
      %410 = vector.shape_cast %409 : vector<1x1x16x16xf32> to vector<16x16xf32>
      %411 = vector.shape_cast %408 : vector<16x16xf32> to vector<1x1x16x16xf32>
      tpu.vector_store %arg7[%c0_257, %c6_258, %c0_259, %c0_260], %411 {strides = array<i32>} : memref<1x8x16x16xf32, #tpu.memory_space<vmem>>, vector<1x1x16x16xf32>,
      %c0_261 = arith.constant 0 : index
      %c7_262 = arith.constant 7 : index
      %c0_263 = arith.constant 0 : index
      %c0_264 = arith.constant 0 : index
      %412 = vector.load %arg7[%c0_261, %c7_262, %c0_263, %c0_264] : memref<1x8x16x16xf32, #tpu.memory_space<vmem>>, vector<1x1x16x16xf32>
      %413 = vector.shape_cast %412 : vector<1x1x16x16xf32> to vector<16x16xf32>
      %c7_265 = arith.constant 7 : index
      %414 = memref.load %arg6[%c7_265] : memref<8xf32, #tpu.memory_space<smem>>
      %415 = vector.broadcast %414 : f32 to vector<16x16xf32>
      %416 = arith.addf %413, %415 : vector<16x16xf32>
      %417 = arith.negf %416 : vector<16x16xf32>
      %418 = math.exp %417 : vector<16x16xf32>
      %cst_266 = arith.constant 1.000000e+00 : f32
      %419 = vector.broadcast %cst_266 : f32 to vector<16x16xf32>
      %420 = arith.addf %419, %418 : vector<16x16xf32>
      %421 = arith.divf %419, %420 : vector<16x16xf32>
      %422 = arith.mulf %416, %421 : vector<16x16xf32>
      %c0_267 = arith.constant 0 : index
      %c7_268 = arith.constant 7 : index
      %c0_269 = arith.constant 0 : index
      %c0_270 = arith.constant 0 : index
      %423 = vector.load %arg7[%c0_267, %c7_268, %c0_269, %c0_270] : memref<1x8x16x16xf32, #tpu.memory_space<vmem>>, vector<1x1x16x16xf32>
      %424 = vector.shape_cast %423 : vector<1x1x16x16xf32> to vector<16x16xf32>
      %425 = vector.shape_cast %422 : vector<16x16xf32> to vector<1x1x16x16xf32>
      tpu.vector_store %arg7[%c0_267, %c7_268, %c0_269, %c0_270], %425 {strides = array<i32>} : memref<1x8x16x16xf32, #tpu.memory_space<vmem>>, vector<1x1x16x16xf32>,
    } else {
    }
    return
  }
  func.func @transform_0(%arg0: i32, %arg1: i32) -> (i32, i32, i32, i32) {
    %c0_i32 = arith.constant 0 : i32
    %c0_i32_0 = arith.constant 0 : i32
    %c0_i32_1 = arith.constant 0 : i32
    return %arg0, %arg1, %c0_i32, %c0_i32_0 : i32, i32, i32, i32
  }
  func.func @transform_1(%arg0: i32, %arg1: i32) -> (i32, i32) {
    %c0_i32 = arith.constant 0 : i32
    %c0_i32_0 = arith.constant 0 : i32
    %c0_i32_1 = arith.constant 0 : i32
    return %c0_i32, %c0_i32_0 : i32, i32
  }
  func.func @transform_2(%arg0: i32, %arg1: i32) -> i32 {
    %c0_i32 = arith.constant 0 : i32
    %c0_i32_0 = arith.constant 0 : i32
    return %c0_i32 : i32
  }
  func.func @transform_3(%arg0: i32, %arg1: i32) -> (i32, i32) {
    %c0_i32 = arith.constant 0 : i32
    %c0_i32_0 = arith.constant 0 : i32
    %c0_i32_1 = arith.constant 0 : i32
    return %c0_i32, %c0_i32_0 : i32, i32
  }
  func.func @transform_4(%arg0: i32, %arg1: i32) -> i32 {
    %c0_i32 = arith.constant 0 : i32
    %c0_i32_0 = arith.constant 0 : i32
    return %c0_i32 : i32
  }
  func.func @transform_5(%arg0: i32, %arg1: i32) -> (i32, i32, i32, i32) {
    %c0_i32 = arith.constant 0 : i32
    %c0_i32_0 = arith.constant 0 : i32
    %c0_i32_1 = arith.constant 0 : i32
    %c0_i32_2 = arith.constant 0 : i32
    return %arg0, %c0_i32, %c0_i32_0, %c0_i32_1 : i32, i32, i32, i32
  }
}

</mosaic_0001>

<bundles_post_ra>
// kernel: tpu_custom_call.1
= control target key start
LH: loop header
LB: loop body
LE: loop exit
PB: predicated region body
PF: predicated region fallthrough
CT: control target
= control target key end

     0   :  { %s2503_s0 = inlined_call_operand.hbm [shape: f32[2,4,16,16], index: 0, kind: input, shape index: {}]   ;;  %s2504_s1 = inlined_call_operand.hbm [shape: f32[4,9], index: 1, kind: input, shape index: {}]   ;;  %s2505_s2 = inlined_call_operand.vmem [shape: f32[4], index: 2, kind: input, shape index: {}]   ;;  %s2506_s3 = inlined_call_operand.vmem [shape: f32[4,8], index: 3, kind: input, shape index: {}]   ;;  %s2507_s4 = inlined_call_operand.vmem [shape: f32[8], index: 4, kind: input, shape index: {}]   ;;  %s2508_s5 = inlined_call_operand.hbm [shape: f32[2,8,16,16], index: 5, kind: output, shape index: {}]  }
   0x1   :  { %2527 = sst [smem:[#allocation28_spill]] %s2503_s0 }
   0x2   :  { %2528 = sst [smem:[#allocation29_spill]] %s2504_s1 }
   0x3   :  { %2529 = sst [smem:[#allocation30_spill]] %s2505_s2 }
   0x4   :  { %2530 = sst [smem:[#allocation31_spill]] %s2506_s3 }
   0x5   :  { %2531 = sst [smem:[#allocation32_spill]] %s2507_s4 }
   0x6   :  { %2532 = sst [smem:[#allocation33_spill]] %s2508_s5 }
   0x7   :  { %10 = vsyncpa [#allocation4], 0 }
   0x8   :  { %12 = vsyncpa [#allocation4 + $0x1], 0 }
   0x9   :  { %13 = vsyncpa [#allocation6], 0 }
   0xa   :  { %14 = vsyncpa [#allocation7], 0 }
   0xb   :  { %15 = vsyncpa [#allocation11], 0 }
   0xc   :  { %16 = vsyncpa [#allocation5], 0 }
   0xd   :  { %18 = vsyncpa [#allocation5 + $0x1], 0  ;;  %s1716_s18 = smov 0   ;;  %s1718_s19 = smov 0  }
   0xe   :  { %s1720_s20 = smov 0   ;;  %s1722_s21 = smov 0  }
   0xf   :  { %s1724_s22 = smov 0   ;;  %s1726_s23 = smov 0  }
  0x10   :  { %s1728_s24 = smov 0   ;;  %s1730_s25 = smov 0  }
  0x11   :  { %s1732_s26 = smov 0   ;;  %s1734_s27 = smov 0  }
  0x12   :  { %s1736_s28 = smov 0  }
  0x13 LB: > { %2533 = sst [smem:[#allocation19_spill]] %s1630_s18  ;;  %s1098_s29 = sadd.s32 4294967295, %s1670_s28   ;;  %s1670_s28 = sphi %s1736_s28, %s24_s28   ;;  %s1666_s27 = sphi %s1734_s27, %s2573_s27   ;;  %s1662_s26 = sphi %s1732_s26, %s2580_s26   ;;  %s1658_s25 = sphi %s1730_s25, %s2571_s25   ;;  %s1654_s24 = sphi %s1728_s24, %s2570_s24   ;;  %s1650_s23 = sphi %s1726_s23, %s2579_s23   ;;  %s1646_s22 = sphi %s1724_s22, %s2578_s22   ;;  %s1642_s21 = sphi %s1722_s21, %s2577_s21   ;;  %s1638_s20 = sphi %s1720_s20, %s2576_s20   ;;  %s1634_s19 = sphi %s1718_s19, %s2575_s19   ;;  %s1630_s18 = sphi %s1716_s18, %s2574_s18  }
  0x14   : > { %2534 = sst [smem:[#allocation20_spill]] %s1658_s25  ;;  %s1099_s30 = sadd.s32 4294967294, %s1670_s28  }
  0x15   : > { %2535 = sst [smem:[#allocation21_spill]] %s1662_s26  ;;  %p58_p0 = scmp.ne.s32.totalorder %s1646_s22, %s1642_s21 }
  0x16   : > { %2536 = sst [smem:[#allocation22_spill]] %s1666_s27  ;;  %p1772_p1 = scmp.eq.s32.totalorder %s1098_s29, 0 }
  0x17   : > { %p165_p2 = scmp.ne.s32.totalorder %s1638_s20, %s1634_s19  ;;  %p166_p3 = scmp.eq.s32.totalorder %s1098_s29, 3 }
  0x18   : > { %s2537_s6 = scalar_select %p1772_p1, 1, 0 }
  0x19   : > { %p1780_p4 = por %p1772_p1, %p58_p0  ;;  %p171_p5 = scmp.ne.s32.totalorder %s1634_s19, %s1630_s18 }
  0x1a   : > { %p1786_p6 = por %p166_p3, %p165_p2  ;;  %p172_p7 = scmp.eq.s32.totalorder %s1099_s30, 3 }
  0x1b   : > { %s2538_s7 = scalar_select %p1780_p4, 1, 0 }
  0x1c   : > { %s2539_s8 = scalar_select %p1786_p6, 1, 0 }
  0x1d   : > { %p1100_p8 = scmp.ge.s32.totalorder %s1670_s28, 1  ;;  %p179_p9 = scmp.lt.s32.totalorder %s1670_s28, 5 }
  0x1e   : > { %2540 = sst [smem:[#allocation23_spill]] %s2539_s8  ;;  %p1792_p10 = por %p172_p7, %p171_p5 }
  0x1f   : > { %p1796_p11 = pnand %p1100_p8, %p179_p9  ;;  %s2544_s3 = sld [smem:[#allocation31_spill]] }
  0x20   : > { %s2541_s9 = scalar_select %p1792_p10, 1, 0 }
  0x21   : > { %p1237_p12 = pneg %p1796_p11  ;;  %s2546_s2 = sld [smem:[#allocation30_spill]] }
  0x22   : > { %2542 = sst [smem:[#allocation24_spill]] %s2541_s9 }
  0x23   : > { %p1807_p13 = pnand %p1237_p12, %p1772_p1 }
  0x25   : > { %s212_s13 = sshll.u32 %s2544_s3, 4  ;;  %p1450_p2 = pneg %p1807_p13  ;;  %s213_s13 = int_to_ptr.vmem [resolvable:$true] %s212_s13 }
  0x26   : > { %s1448_s21 = scalar_lea.vmem %s213_s13, 64  ;;  %p1456_p7 = scmp.lt.s32.totalorder %s213_s13, %s213_s13 }
  0x27   : > { %s201_s17 = sshll.u32 %s2546_s2, 4  ;;  %p1449_p0 = scmp.ne.s32.totalorder %s213_s13, %s1448_s21  ;;  %s202_s17 = int_to_ptr.vmem [resolvable:$true] %s201_s17 }
  0x28   : > { %p1457_p8 = scmp.lt.s32.totalorder %s1448_s21, %s1448_s21 }
  0x29   : > { %p1451_p3 = pnand %p1450_p2, %p1449_p0 }
  0x2a   : > { %p1458_p9 = por %p1457_p8, %p1456_p7 }
  0x2b   : > { %p1452_p5 = pneg %p1451_p3 }
  0x2d   : > { %p1459_p12 = pnand %p1458_p9, %p1452_p5 }
  0x2f   : > { %1462 = shalt.err (!%p1459_p12)
}
  0x30   : > { %s1672_s29 = smov [#allocation10]   ;;  %s2547_s1 = sld [smem:[#allocation29_spill]] }
  0x31   : > { %1246 = dma.vmem_to_smem (!%p1807_p13), %s213_s13, 64, %s1672_s29, [#allocation11]  }
  0x36   : > { %s1463_s12 = scalar_lea.hbm %s2547_s1, 64 }
  0x37   : > { %p1464_p10 = scmp.ne.s32.totalorder %s2547_s1, %s1463_s12  ;;  %p1470_p5 = scmp.lt.u32.totalorder %s1463_s12, %s2547_s1 }
  0x39   : > { %p1466_p0 = pnand %p1464_p10, %p1450_p2 }
  0x3b   : > { %p1467_p3 = pneg %p1466_p0 }
  0x3d   : > { %p1472_p7 = pnand %p1470_p5, %p1467_p3 }
  0x3f   : > { %1475 = shalt.err (!%p1472_p7)
}
  0x40   : > { %s1673_s3 = smov [#allocation8]   ;;  %s1476_s30 = scalar_lea.vmem %s202_s17, 16 }
  0x41   : > { %1240 = dma.hbm_to_smem (!%p1807_p13), %s2547_s1, 64, %s1673_s3, [#allocation6]  }
  0x42   : > { %p1477_p8 = scmp.ne.s32.totalorder %s202_s17, %s1476_s30  ;;  %p1484_p12 = scmp.lt.s32.totalorder %s202_s17, %s202_s17 }
  0x43   : > { %p1485_p0 = scmp.lt.s32.totalorder %s1476_s30, %s1476_s30 }
  0x44   : > { %p1479_p10 = pnand %p1477_p8, %p1450_p2 }
  0x45   : > { %p1486_p6 = por %p1485_p0, %p1484_p12 }
  0x46   : > { %p1480_p9 = pneg %p1479_p10 }
  0x48   : > { %p1487_p3 = pnand %p1486_p6, %p1480_p9 }
  0x4a   : > { %1490 = shalt.err (!%p1487_p3)
}
  0x4b   : > { %s1674_s2 = smov [#allocation9]   ;;  %s2548_s4 = sld [smem:[#allocation32_spill]] }
  0x4c   : > { %1243 = dma.vmem_to_smem (!%p1807_p13), %s202_s17, 16, %s1674_s2, [#allocation7]  }
  0x51   : > { %s223_s3 = sshll.u32 %s2548_s4, 4  ;;  %s224_s3 = int_to_ptr.vmem [resolvable:$true] %s223_s3 }
  0x52   : > { %s1491_s15 = scalar_lea.vmem %s224_s3, 16  ;;  %p1499_p10 = scmp.lt.s32.totalorder %s224_s3, %s224_s3 }
  0x53   : > { %p1492_p5 = scmp.ne.s32.totalorder %s224_s3, %s1491_s15  ;;  %p1500_p12 = scmp.lt.s32.totalorder %s1491_s15, %s1491_s15 }
  0x55   : > { %p1494_p7 = pnand %p1492_p5, %p1450_p2  ;;  %p1501_p6 = por %p1500_p12, %p1499_p10 }
  0x57   : > { %p1495_p8 = pneg %p1494_p7 }
  0x59   : > { %p1502_p9 = pnand %p1501_p6, %p1495_p8 }
  0x5b   : > { %1505 = shalt.err (!%p1502_p9)
}
  0x5c   : > { %s1675_s16 = smov [#allocation12]   ;;  %s33_s17 = sadd.s32 1, %s1662_s26 }
  0x5d   : > { %1249 = dma.vmem_to_smem (!%p1807_p13), %s224_s3, 16, %s1675_s16, [#allocation11]  }
  0x5e   : > { %p34_p2 = scmp.ge.s32.totalorder %s33_s17, 2  ;;  %s36_s21 = sadd.s32 1, %s1666_s27 }
  0x5f   : > { %s45_s13 = sadd.s32 1, %s1650_s23  ;;  %p52_p0 = scmp.ne.s32.totalorder %s1650_s23, %s1646_s22 }
  0x60   : > { %s2582_s17 = smov (%p34_p2, %s33_s17), 0  ;;  %s2584_s21 = smov (!%p34_p2, %s36_s21), %s1666_s27 }
  0x61   : > { %2549 = sst [smem:[#allocation25_spill]] %s2582_s17  ;;  %s41_s14 = ssub.s32 %s1662_s26, %s2582_s17 }
  0x62   : > { %p53_p3 = scmp.eq.s32.totalorder %s1670_s28, 0  ;;  %p38_p5 = scmp.ge.s32.totalorder %s2584_s21, 2 }
  0x63   : > { %s155_s29 = sadd.s32 1, %s1638_s20  ;;  %p1262_p13 = scmp.lt.s32.totalorder %s1670_s28, 4 }
  0x64   : > { %p1863_p7 = por %p53_p3, %p52_p0  ;;  %s2586_s21 = smov (%p38_p5, %s2584_s21), 0 }
  0x65   : > { %2551 = sst [smem:[#allocation26_spill]] %s2586_s21  ;;  %s234_s2 = sand.u32 1, %s1650_s23  }
  0x66   : > { %s1211_s11 = sshll.u32 %s1662_s26, 2  ;;  %s40_s12 = ssub.s32 %s1666_s27, %s2586_s21 }
  0x67   : > { %s42_s3 = sor.u32 %s41_s14, %s40_s12  ;;  %p153_p8 = scmp.eq.s32.totalorder %s40_s12, 0 }
  0x68   : > { %p43_p10 = scmp.eq.s32.totalorder %s42_s3, 0  ;;  %s1106_s15 = sshll.u32 %s234_s2, 5 }
  0x69   : > { %s1875_s16 = scalar_select %p153_p8, %s1638_s20, %s155_s29  }
  0x6a   : > { %s1878_s1 = scalar_select %p43_p10, %s1650_s23, %s45_s13  }
  0x6b   : > { %s1109_s4 = sshll.u32 %s1666_s27, 3  ;;  %s238_s9 = scalar_lea.vmem [#allocation3], %s1106_s15 }
  0x6c   : > { %2552 = sst [smem:[#allocation27_spill]] %s1878_s1  ;;  %s245_s17 = sadd.s32 %s1211_s11, %s1109_s4 }
  0x6d   : > { %s248_s18 = sshll.u32 %s238_s9, 4  ;;  %s1110_s5 = sshll.u32 %s245_s17, 7  ;;  %s1881_s18 = int_to_ptr.vmem [resolvable:$true] %s248_s18 }
  0x6e   : > { %s2553_s0 = sld [smem:[#allocation28_spill]]  ;;  %p1892_p12 = pnand %p1262_p13, %p1863_p7 }
  0x6f   : > { %s1896_s4 = scalar_lea.sflag [#allocation4], %s234_s2 }
  0x70   : > { %p1508_p9 = pneg %p1892_p12 }
  0x74   : > { %s1886_s26 = scalar_lea.hbm %s2553_s0, %s1110_s5  ;;  %s1511_s8 = scalar_lea.hbm %s2553_s0, 2048 }
  0x75   : > { %s1506_s9 = scalar_lea.hbm %s1886_s26, 512  ;;  %p1512_p3 = scmp.lt.u32.totalorder %s1886_s26, %s2553_s0 }
  0x76   : > { %p1507_p6 = scmp.ne.s32.totalorder %s1886_s26, %s1506_s9  ;;  %p1513_p5 = scmp.lt.u32.totalorder %s1511_s8, %s1506_s9 }
  0x77   : > { %p1515_p13 = scmp.lt.u32.totalorder %s1506_s9, %s1886_s26 }
  0x78   : > { %p1509_p2 = pnand %p1508_p9, %p1507_p6  ;;  %p1514_p7 = por %p1513_p5, %p1512_p3 }
  0x7a   : > { %p1510_p0 = pneg %p1509_p2  ;;  %p1516_p8 = por %p1515_p13, %p1514_p7 }
  0x7c   : > { %p1517_p10 = pnand %p1516_p8, %p1510_p0 }
  0x7e   : > { %1520 = shalt.err (!%p1517_p10)
}
  0x7f   : > { %s1521_s29 = scalar_lea.vmem %s1881_s18, 512  ;;  %s1676_s30 = smov [#allocation3]  }
  0x80   : > { %p1522_p6 = scmp.ne.s32.totalorder %s1881_s18, %s1521_s29  ;;  %s1526_s2 = sshll.u32 %s1676_s30, 4  ;;  %s1527_s2 = int_to_ptr.vmem [resolvable:$false] %s1526_s2 }
  0x81   : > { %s1528_s11 = scalar_lea.vmem %s1527_s2, 1024  ;;  %p1529_p4 = scmp.lt.s32.totalorder %s1881_s18, %s1527_s2 }
  0x82   : > { %p1524_p2 = pnand %p1522_p6, %p1508_p9  ;;  %p1530_p3 = scmp.lt.s32.totalorder %s1528_s11, %s1521_s29 }
  0x84   : > { %p1525_p1 = pneg %p1524_p2  ;;  %p1531_p5 = por %p1530_p3, %p1529_p4 }
  0x86   : > { %p1532_p7 = pnand %p1531_p5, %p1525_p1 }
  0x88   : > { %1535 = shalt.err (!%p1532_p7)
}
  0x89   : > { %s1677_s12 = smov 128   ;;  %s1678_s3 = smov 8  }
  0x8a   : > { %1253 = dma.hbm_to_vmem [thread:$0]  (!%p1892_p12), %s1886_s26, 512, %s1881_s18, %s1896_s4, %s1677_s12, %s1677_s12, %s1678_s3  }
  0x8b   : > { %260 = sbr.rel (%p1796_p11) target bundleno = 592 (0x250), region = 40  ;;  %s262_s15 = sand.u32 (!%p1796_p11), 1, %s1646_s22  }
  0x8c   : > { %s1112_s9 = sshll.u32 (!%p1796_p11), %s262_s15, 5  ;;  %s263_s5 = scalar_lea.sflag (!%p1796_p11), [#allocation4], %s262_s15 }
  0x8d   : > { %s1927_s25 = scalar_lea.vmem (!%p1796_p11), [#allocation3], %s1112_s9  ;;  %p2555_p1 = scmp.ne.s32.totalorder (!%p1796_p11), %s2538_s7, 0 }
  0x92   : > { %1609 = dma.done.wait (%p2555_p1), %s263_s5, 512  }
  0x93   : > { %1611 = vsyncadd (%p2555_p1), %s263_s5, 4294966784  ;;  %p2556_p4 = scmp.ne.s32.totalorder %s2537_s6, 0 }
  0x95   : > { %1613 = dma.done.wait (%p2556_p4), [#allocation6], 64  }
  0x96   : > { %1615 = vsyncadd (%p2556_p4), [#allocation6], 4294967232 }
  0x97   : > { %1617 = dma.done.wait (%p2556_p4), [#allocation7], 16  }
  0x98   : > { %1619 = vsyncadd (%p2556_p4), [#allocation7], 4294967280 }
  0x99   : > { %1621 = dma.done.wait (%p2556_p4), [#allocation11], 80  }
  0x9a   : > { %1623 = vsyncadd (%p2556_p4), [#allocation11], 4294967216 }
  0x9b   : > { %287 = sfence }
  0x9c   : > { %s2520_s18 = sand.u32 1, %s1634_s19   ;;  %s1118_s26 = sshll.u32 %s1654_s24, 1 }
  0x9d   : > { %s1117_s7 = sshll.u32 %s2520_s18, 7  ;;  %p1119_p11 = scmp.ne.s32.totalorder %s1654_s24, 0 }
  0x9e   : > { %s1949_s10 = scalar_lea.vmem [#allocation13], %s1117_s7  ;;  %vm316_vm0 = vcmask (!%p1119_p11), 146432   ;;  %vm319_vm1 = vcmask (!%p1119_p11), 140288   ;;  %vm324_vm2 = vcmask (!%p1119_p11), 130048   ;;  %v1679_v0 = vmov (!%p1119_p11), 0.0  }
  0x9f   : > { %315 = sbr.rel (%p1119_p11) target bundleno = 170 (0xaa), region = 64  ;;  %317 = vst.msk [vmem:[#allocation2] sm:$0xff] (!%p1119_p11), %vm316_vm0, %v1679_v0  ;;  %318 = vst.msk [vmem:[#allocation2 + $0x8] sm:$0xff] (!%p1119_p11), %vm316_vm0, %v1679_v0 }
  0xa0   : > { %321 = vst.msk [vmem:[#allocation2 + $0x18] sm:$0xff] (!%p1119_p11), %vm316_vm0, %v1679_v0  ;;  %322 = vst.msk [vmem:[#allocation2 + $0x20] sm:$0xff] (!%p1119_p11), %vm316_vm0, %v1679_v0 }
  0xa1   : > { %320 = vst.msk [vmem:[#allocation2 + $0x10] sm:$0x3] (!%p1119_p11), %vm319_vm1, %v1679_v0  ;;  %323 = vst.msk [vmem:[#allocation2 + $0x28] sm:$0x3] (!%p1119_p11), %vm319_vm1, %v1679_v0 }
  0xa2   : > { %325 = vst.msk [vmem:[%s1949_s10] sm:$0xff] (!%p1119_p11), %vm324_vm2, %v1679_v0  ;;  %326 = vst.msk [vmem:[%s1949_s10 + $0x8] sm:$0xff] (!%p1119_p11), %vm324_vm2, %v1679_v0 }
  0xa3   : > { %327 = vst.msk [vmem:[%s1949_s10 + $0x10] sm:$0xff] (!%p1119_p11), %vm324_vm2, %v1679_v0  ;;  %328 = vst.msk [vmem:[%s1949_s10 + $0x18] sm:$0xff] (!%p1119_p11), %vm324_vm2, %v1679_v0 }
  0xa4   : > { %329 = vst.msk [vmem:[%s1949_s10 + $0x20] sm:$0xff] (!%p1119_p11), %vm324_vm2, %v1679_v0  ;;  %330 = vst.msk [vmem:[%s1949_s10 + $0x28] sm:$0xff] (!%p1119_p11), %vm324_vm2, %v1679_v0 }
  0xa5   : > { %331 = vst.msk [vmem:[%s1949_s10 + $0x30] sm:$0xff] (!%p1119_p11), %vm324_vm2, %v1679_v0  ;;  %332 = vst.msk [vmem:[%s1949_s10 + $0x38] sm:$0xff] (!%p1119_p11), %vm324_vm2, %v1679_v0 }
  0xa6   : > { %333 = vst.msk [vmem:[%s1949_s10 + $0x40] sm:$0xff] %vm324_vm2, %v1679_v0  ;;  %334 = vst.msk [vmem:[%s1949_s10 + $0x48] sm:$0xff] %vm324_vm2, %v1679_v0 }
  0xa7   : > { %335 = vst.msk [vmem:[%s1949_s10 + $0x50] sm:$0xff] %vm324_vm2, %v1679_v0  ;;  %336 = vst.msk [vmem:[%s1949_s10 + $0x58] sm:$0xff] %vm324_vm2, %v1679_v0 }
  0xa8   : > { %337 = vst.msk [vmem:[%s1949_s10 + $0x60] sm:$0xff] %vm324_vm2, %v1679_v0  ;;  %338 = vst.msk [vmem:[%s1949_s10 + $0x68] sm:$0xff] %vm324_vm2, %v1679_v0 }
  0xa9   : > { %339 = vst.msk [vmem:[%s1949_s10 + $0x70] sm:$0xff] %vm324_vm2, %v1679_v0  ;;  %340 = vst.msk [vmem:[%s1949_s10 + $0x78] sm:$0xff] %vm324_vm2, %v1679_v0 }
  0xaa PF: > { %v341_v1 = vld [vmem:[%s1927_s25] sm:$0xff]  ;;  %v343_v2 = vld [vmem:[%s1927_s25 + $0x10] sm:$0xff]  ;;  %s1680_s6 = smov 1   ;;  %v342_v3 = vld [vmem:[%s1927_s25 + $0x8] sm:$0xff]  ;;  %s1989_s13 = sshll.u32 %s1654_s24, 8  ;;  %vm361_vm3 = vcmask 138248  }
  0xab   : > { %349 = vrot.lane.b32.xlu0 %v341_v1, %s1680_s6  ;;  %353 = vrot.lane.b32.xlu1 %v343_v2, %s1680_s6  ;;  %v344_v4 = vld [vmem:[%s1927_s25 + $0x18] sm:$0xff]  ;;  %s375_s4 = sadd.s32 1, %s1989_s13  ;;  %s1995_s17 = sadd.s32 128, %s1989_s13  ;;  %vm652_vm4 = vcmask 130048  }
  0xac   : > { %s376_s8 = sld [smem:[#allocation8 + %s375_s4]]  ;;  %s390_s14 = sadd.s32 2, %s1989_s13 }
  0xad   : > { %s512_s29 = sadd.s32 1, %s1995_s17  ;;  %s391_s30 = sld [smem:[#allocation8 + %s390_s14]] }
  0xae   : > { %s2003_s2 = sld [smem:[#allocation8 + %s512_s29]]  ;;  %s527_s11 = sadd.s32 2, %s1995_s17 }
  0xaf   : > { %351 = vrot.lane.b32.xlu0 %v342_v3, %s1680_s6  ;;  %355 = vrot.lane.b32.xlu1 %v344_v4, %s1680_s6  ;;  %s2011_s12 = sld [smem:[#allocation8 + %s527_s11]]  ;;  %s1681_s3 = smov 127  }
  0xb0   : > { %s414_s15 = sadd.s32 4, %s1989_s13  ;;  %s1682_s5 = smov 126  }
  0xb1   : > { %s415_s9 = sld [smem:[#allocation8 + %s414_s15]]  ;;  %s429_s25 = sadd.s32 5, %s1989_s13 }
  0xb2   : > { %v377_v9 = vstv %s376_s8  ;;  %s430_s7 = sld [smem:[#allocation8 + %s429_s25]]  ;;  %s551_s6 = sadd.s32 4, %s1995_s17 }
  0xb3   : > { %v392_v12 = vstv %s391_s30  ;;  %s552_s8 = sld [smem:[#allocation8 + %s551_s6]]  ;;  %s2521_s30 = sadd.s32 5, %s1995_s17 }
  0xb4   : > { %v514_v15 = vstv %s2003_s2  ;;  %s567_s2 = sld [smem:[#allocation8 + %s2521_s30]]  ;;  %s2560_s27 = sadd.s32 6, %s1995_s17 }
  0xb5   : > { %v529_v20 = vstv %s2011_s12  ;;  %s453_s12 = sadd.s32 7, %s1989_s13  ;;  %s2204_s1 = sld [smem:[#allocation10 + %s2560_s27]] }
  0xb6   : > { %p1154_p12 = scmp.ne.s32.totalorder %s1654_s24, 1 }
  0xb7   : > { %v416_v25 = vstv %s415_s9  ;;  %s454_s9 = sld [smem:[#allocation8 + %s453_s12]] }
  0xb8   : > { %v431_v28 = vstv %s430_s7  ;;  %s468_s7 = sadd.s32 8, %s1989_s13  ;;  %s1166_s27 = sld [smem:[#allocation12 + $0x2]] (!%p1154_p12) }
  0xb9   : > { %v553_v33 = vstv %s552_s8  ;;  %s469_s18 = sld [smem:[#allocation8 + %s468_s7]]  ;;  %s2522_s8 = sadd.s32 7, %s1995_s17 }
  0xba   : > { %v568_v36 = vstv %s567_s2  ;;  %s591_s30 = sld [smem:[#allocation8 + %s2522_s8]]  ;;  %s605_s2 = sadd.s32 8, %s1995_s17 }
  0xbb   : > { %s606_s7 = sld [smem:[#allocation8 + %s605_s2]] }
  0xbc   : > { %s503_s2 = sld [smem:[#allocation8 + %s1995_s17]] }
  0xbd   : > { %v455_v41 = vstv %s454_s9  ;;  %s2311_s24 = sld [smem:[#allocation12 + $0x5]] (!%p1154_p12) }
  0xbf   : > { %v470_v44 = vstv %s469_s18  ;;  %s367_s18 = sld [smem:[#allocation8 + %s1989_s13]] }
  0xc0   : > { %v592_v49 = vstv %s591_s30  ;;  %s405_s30 = sadd.s32 3, %s1989_s13 }
  0xc1   : > { %v607_v52 = vstv %s606_s7  ;;  %s406_s9 = sld [smem:[#allocation8 + %s405_s30]]  ;;  %s2524_s7 = sadd.s32 3, %s1995_s17 }
  0xc2   : > { %s2113_s8 = sld [smem:[#allocation8 + %s2524_s7]]  ;;  %v507_v3 = vstv %s503_s2  ;;  %s501_s2 = sadd.s32 1, %s1118_s26 }
  0xc3   : > { %s2557_s7 = sadd.s32 5, %s1995_s17 }
  0xc4   : > { %s2191_s0 = sld [smem:[#allocation10 + %s2557_s7]] }
  0xc5   : > { %v370_v57 = vstv %s367_s18  ;;  %s2523_s18 = sadd.s32 6, %s1995_s17  ;;  %s2368_s7 = sld [smem:[#allocation12 + $0x7]] (!%p1154_p12) }
  0xc7   : > { %v409_v60 = vstv %s406_s9  ;;  %s483_s9 = sld [smem:[#allocation9 + %s1118_s26]] }
  0xc8   : > { %s2148_s26 = sld [smem:[#allocation10 + %s375_s4]] }
  0xc9   : > { %s2171_s4 = sld [smem:[#allocation10 + %s405_s30]]  ;;  %s2558_s30 = sadd.s32 7, %s1995_s17 }
  0xca   : > { %s2195_s21 = sld [smem:[#allocation10 + %s2558_s30]] }
 0x11d   : > { %v350_v5 = vpop.permute.xlu0 %349  ;;  %v354_v6 = vpop.permute.xlu1 %353 }
 0x11e   : > { %362 = vst.msk [vmem:[#allocation2 + $0x1] sm:$0xff] %vm361_vm3, %v350_v5  ;;  %364 = vst.msk [vmem:[#allocation2 + $0x19] sm:$0xff] %vm361_vm3, %v354_v6 }
 0x121   : > { %v352_v7 = vpop.permute.xlu0 %351  ;;  %v356_v8 = vpop.permute.xlu1 %355 }
 0x122   : > { %363 = vst.msk [vmem:[#allocation2 + $0x9] sm:$0xff] %vm361_vm3, %v352_v7  ;;  %365 = vst.msk [vmem:[#allocation2 + $0x21] sm:$0xff] %vm361_vm3, %v356_v8 }
 0x125   : > { %v2006_v10 = vld [vmem:[#allocation2] sm:$0xff]  ;;  %v2017_v14 = vld [vmem:[#allocation2 + $0x18] sm:$0xff] }
 0x126   : > { %v378_v11 = vmul.f32 %v377_v9, %v2006_v10  ;;  %v393_v16 = vmul.f32 %v392_v12, %v2006_v10  ;;  %v515_v18 = vmul.f32 %v514_v15, %v2017_v14  ;;  %v530_v22 = vmul.f32 %v529_v20, %v2017_v14  ;;  %v2039_v24 = vld [vmem:[#allocation2 + $0x1] sm:$0xff]  ;;  %v2057_v32 = vld [vmem:[#allocation2 + $0x19] sm:$0xff] }
 0x127   : > { %v417_v26 = vmul.f32 %v416_v25, %v2039_v24  ;;  %v432_v30 = vmul.f32 %v431_v28, %v2039_v24  ;;  %v554_v34 = vmul.f32 %v553_v33, %v2057_v32  ;;  %v569_v38 = vmul.f32 %v568_v36, %v2057_v32 }
 0x128   : > { %382 = vrot.lane.b32.xlu0 %v378_v11, %s1681_s3  ;;  %v371_v59 = vmul.f32 %v370_v57, %v2006_v10  ;;  %v410_v2 = vmul.f32 %v409_v60, %v2039_v24  ;;  %v546_v11 = vstv %s2113_s8  ;;  %s582_s8 = sld [smem:[#allocation8 + %s2523_s18]] }
 0x129   : > { %v2015_v13 = vld [vmem:[#allocation2 + $0x8] sm:$0xff]  ;;  %v2030_v21 = vld [vmem:[#allocation2 + $0x20] sm:$0xff]  ;;  %s2167_s18 = sld [smem:[#allocation10 + %s1989_s13]] }
 0x12a   : > { %v379_v17 = vmul.f32 %v377_v9, %v2015_v13  ;;  %v394_v19 = vmul.f32 %v392_v12, %v2015_v13  ;;  %v516_v23 = vmul.f32 %v514_v15, %v2030_v21  ;;  %v531_v27 = vmul.f32 %v529_v20, %v2030_v21  ;;  %v2048_v29 = vld [vmem:[#allocation2 + $0x9] sm:$0xff]  ;;  %v2066_v37 = vld [vmem:[#allocation2 + $0x21] sm:$0xff] }
 0x12b   : > { %v418_v31 = vmul.f32 %v416_v25, %v2048_v29  ;;  %v433_v35 = vmul.f32 %v431_v28, %v2048_v29  ;;  %v555_v39 = vmul.f32 %v553_v33, %v2066_v37  ;;  %v2073_v40 = vld [vmem:[#allocation2 + $0x2] sm:$0xff]  ;;  %v570_v43 = vmul.f32 %v568_v36, %v2066_v37  ;;  %v2082_v45 = vld [vmem:[#allocation2 + $0xa] sm:$0xff]  ;;  %v2088_v48 = vld [vmem:[#allocation2 + $0x1a] sm:$0xff] }
 0x12c   : > { %397 = vrot.lane.b32.xlu0 %v393_v16, %s1682_s5  ;;  %384 = vrot.lane.b32.xlu1 %v379_v17, %s1681_s3  ;;  %v456_v42 = vmul.f32 %v455_v41, %v2073_v40  ;;  %v471_v46 = vmul.f32 %v470_v44, %v2073_v40  ;;  %v457_v47 = vmul.f32 %v455_v41, %v2082_v45  ;;  %v2094_v53 = vld [vmem:[#allocation2 + $0x22] sm:$0xff] }
 0x12d   : > { %v593_v50 = vmul.f32 %v592_v49, %v2088_v48  ;;  %v472_v51 = vmul.f32 %v470_v44, %v2082_v45  ;;  %v608_v54 = vmul.f32 %v607_v52, %v2088_v48  ;;  %v594_v55 = vmul.f32 %v592_v49, %v2094_v53 }
 0x12e   : > { %v609_v56 = vmul.f32 %v607_v52, %v2094_v53  ;;  %v372_v0 = vmul.f32 %v370_v57, %v2015_v13  ;;  %v508_v9 = vmul.f32 %v507_v3, %v2017_v14  ;;  %v411_v10 = vmul.f32 %v409_v60, %v2048_v29 }
 0x12f   : > { %v509_v17 = vmul.f32 %v507_v3, %v2030_v21  ;;  %v548_v25 = vmul.f32 %v546_v11, %v2066_v37  ;;  %v585_v37 = vstv %s582_s8  ;;  %s2152_s8 = sld [smem:[#allocation10 + %s390_s14]] }
 0x130   : > { %519 = vrot.lane.b32.xlu0 %v515_v18, %s1681_s3  ;;  %399 = vrot.lane.b32.xlu1 %v394_v19, %s1682_s5  ;;  %v547_v19 = vmul.f32 %v546_v11, %v2057_v32  ;;  %v587_v52 = vmul.f32 %v585_v37, %v2094_v53  ;;  %s2175_s14 = sld [smem:[#allocation10 + %s512_s29]]  ;;  %s2559_s29 = sadd.s32 3, %s1995_s17 }
 0x134   : > { %534 = vrot.lane.b32.xlu0 %v530_v22, %s1682_s5  ;;  %521 = vrot.lane.b32.xlu1 %v516_v23, %s1681_s3 }
 0x138   : > { %421 = vrot.lane.b32.xlu0 %v417_v26, %s1681_s3  ;;  %536 = vrot.lane.b32.xlu1 %v531_v27, %s1682_s5 }
 0x13c   : > { %436 = vrot.lane.b32.xlu0 %v432_v30, %s1682_s5  ;;  %423 = vrot.lane.b32.xlu1 %v418_v31, %s1681_s3 }
 0x140   : > { %558 = vrot.lane.b32.xlu0 %v554_v34, %s1681_s3  ;;  %438 = vrot.lane.b32.xlu1 %v433_v35, %s1682_s5 }
 0x144   : > { %573 = vrot.lane.b32.xlu0 %v569_v38, %s1682_s5  ;;  %560 = vrot.lane.b32.xlu1 %v555_v39, %s1681_s3 }
 0x148   : > { %460 = vrot.lane.b32.xlu0 %v456_v42, %s1681_s3  ;;  %575 = vrot.lane.b32.xlu1 %v570_v43, %s1682_s5 }
 0x14c   : > { %475 = vrot.lane.b32.xlu0 %v471_v46, %s1682_s5  ;;  %462 = vrot.lane.b32.xlu1 %v457_v47, %s1681_s3  ;;  %v586_v46 = vmul.f32 %v585_v37, %v2088_v48 }
 0x150   : > { %597 = vrot.lane.b32.xlu0 %v593_v50, %s1681_s3  ;;  %477 = vrot.lane.b32.xlu1 %v472_v51, %s1682_s5 }
 0x154   : > { %612 = vrot.lane.b32.xlu0 %v608_v54, %s1682_s5  ;;  %599 = vrot.lane.b32.xlu1 %v594_v55, %s1681_s3  ;;  %s444_s3 = sadd.s32 6, %s1989_s13  ;;  %s2209_s13 = sld [smem:[#allocation10 + %s1995_s17]] }
 0x155   : > { %s2306_s17 = sld [smem:[#allocation12 + $0x4]] (!%p1154_p12) }
 0x158   : > { %614 = vrot.lane.b32.xlu1 %v609_v56, %s1682_s5  ;;  %s445_s5 = sld [smem:[#allocation8 + %s444_s3]]  ;;  %v484_v56 = vstv %s483_s9 }
 0x159   : > { %s2156_s9 = sld [smem:[#allocation10 + %s414_s15]] }
 0x15a   : > { %s2179_s15 = sld [smem:[#allocation10 + %s527_s11]] }
 0x15b   : > { %s2200_s11 = sld [smem:[#allocation10 + %s2559_s29]] }
 0x15e   : > { %v448_v26 = vstv %s445_s5  ;;  %s620_s5 = sld [smem:[#allocation9 + %s501_s2]] }
 0x15f   : > { %v449_v31 = vmul.f32 %v448_v26, %v2073_v40  ;;  %v450_v38 = vmul.f32 %v448_v26, %v2082_v45  ;;  %s2160_s2 = sld [smem:[#allocation10 + %s429_s25]] }
 0x160   : > { %s2183_s25 = sld [smem:[#allocation10 + %s551_s6]] }
 0x161   : > { %s2316_s6 = sld [smem:[#allocation12 + $0x6]] (!%p1154_p12) }
 0x165   : > { %v727_v26 = vstv %s2160_s2 }
 0x19a   : > { %v383_v58 = vpop.permute.xlu0 %382 }
 0x19b   : > { %v388_v61 = vadd.f32 %v383_v58, %v371_v59 }
 0x19e   : > { %v385_v62 = vpop.permute.xlu1 %384  ;;  %v398_v63 = vpop.permute.xlu0 %397 }
 0x19f   : > { %v403_v1 = vadd.f32 %v398_v63, %v388_v61  ;;  %v389_v4 = vadd.f32 %v385_v62, %v372_v0 }
 0x1a1   : > { %v412_v5 = vadd.f32 %v410_v2, %v403_v1  ;;  %v621_v2 = vstv %s620_s5  ;;  %s2164_s5 = sld [smem:[#allocation10 + %s453_s12]] }
 0x1a2   : > { %v400_v6 = vpop.permute.xlu1 %399  ;;  %v520_v7 = vpop.permute.xlu0 %519  ;;  %s2187_s12 = sld [smem:[#allocation10 + %s444_s3]] }
 0x1a3   : > { %v404_v8 = vadd.f32 %v400_v6, %v389_v4  ;;  %v525_v12 = vadd.f32 %v520_v7, %v508_v9 }
 0x1a5   : > { %v413_v13 = vadd.f32 %v411_v10, %v404_v8 }
 0x1a6   : > { %v522_v15 = vpop.permute.xlu1 %521  ;;  %v535_v16 = vpop.permute.xlu0 %534 }
 0x1a7   : > { %v540_v18 = vadd.f32 %v535_v16, %v525_v12  ;;  %v526_v20 = vadd.f32 %v522_v15, %v509_v17 }
 0x1a8   : > { %v744_v37 = vstv %s2187_s12 }
 0x1a9   : > { %v549_v22 = vadd.f32 %v547_v19, %v540_v18 }
 0x1aa   : > { %v537_v23 = vpop.permute.xlu1 %536  ;;  %v422_v14 = vpop.permute.xlu0 %421 }
 0x1ab   : > { %v541_v24 = vadd.f32 %v537_v23, %v526_v20  ;;  %v427_v27 = vadd.f32 %v422_v14, %v412_v5  ;;  %v676_v14 = vstv %s2152_s8 }
 0x1ad   : > { %v550_v28 = vadd.f32 %v548_v25, %v541_v24  ;;  %v710_v24 = vstv %s2156_s9 }
 0x1ae   : > { %v424_v29 = vpop.permute.xlu1 %423  ;;  %v437_v30 = vpop.permute.xlu0 %436 }
 0x1af   : > { %v442_v21 = vadd.f32 %v437_v30, %v427_v27  ;;  %v428_v32 = vadd.f32 %v424_v29, %v413_v13  ;;  %v761_v27 = vstv %s2164_s5  ;;  %v693_v30 = vstv %s2171_s4 }
 0x1b1   : > { %v451_v33 = vadd.f32 %v449_v31, %v442_v21 }
 0x1b2   : > { %v439_v34 = vpop.permute.xlu1 %438  ;;  %v559_v35 = vpop.permute.xlu0 %558 }
 0x1b3   : > { %v443_v36 = vadd.f32 %v439_v34, %v428_v32  ;;  %v564_v39 = vadd.f32 %v559_v35, %v549_v22  ;;  %v659_v22 = vstv %s2148_s26 }
 0x1b5   : > { %v452_v41 = vadd.f32 %v450_v38, %v443_v36  ;;  %v665_v38 = vstv %s2175_s14 }
 0x1b6   : > { %v561_v42 = vpop.permute.xlu1 %560  ;;  %v574_v43 = vpop.permute.xlu0 %573 }
 0x1b7   : > { %v579_v44 = vadd.f32 %v574_v43, %v564_v39  ;;  %v565_v47 = vadd.f32 %v561_v42, %v550_v28  ;;  %v641_v28 = vstv %s2167_s18  ;;  %v638_v39 = vld [vmem:[%s1949_s10] sm:$0xff]  ;;  %v682_v42 = vstv %s2179_s15 }
 0x1b8   : > { %v716_v43 = vstv %s2183_s25 }
 0x1b9   : > { %v588_v40 = vadd.f32 %v586_v46, %v579_v44  ;;  %v733_v44 = vstv %s2191_s0  ;;  %v767_v46 = vstv %s2195_s21  ;;  %s780_s0 = sld [smem:[#allocation12]] (!%p1154_p12)  ;;  %s2304_s21 = sld [smem:[#allocation12 + $0x3]] (!%p1154_p12) }
 0x1ba   : > { %v576_v49 = vpop.permute.xlu1 %575  ;;  %v461_v50 = vpop.permute.xlu0 %460 }
 0x1bb   : > { %v580_v51 = vadd.f32 %v576_v49, %v565_v47  ;;  %v466_v45 = vadd.f32 %v461_v50, %v451_v33  ;;  %v699_v47 = vstv %s2200_s11  ;;  %v1134_v49 = vld [vmem:[%s1949_s10 + $0x30] sm:$0xff] }
 0x1bd   : > { %v589_v54 = vadd.f32 %v587_v52, %v580_v51  ;;  %v750_v52 = vstv %s2204_s1  ;;  %s1159_s1 = sld [smem:[#allocation12 + $0x1]] (!%p1154_p12) }
 0x1be   : > { %v463_v55 = vpop.permute.xlu1 %462  ;;  %v476_v57 = vpop.permute.xlu0 %475 }
 0x1bf   : > { %v481_v58 = vadd.f32 %v476_v57, %v466_v45  ;;  %v467_v59 = vadd.f32 %v463_v55, %v452_v41  ;;  %v1126_v41 = vld [vmem:[%s1949_s10 + $0x10] sm:$0xff]  ;;  %v1138_v45 = vld [vmem:[%s1949_s10 + $0x40] sm:$0xff] }
 0x1c0   : > { %v1146_v55 = vld [vmem:[%s1949_s10 + $0x60] sm:$0xff] }
 0x1c1   : > { %v485_v60 = vadd.f32 %v484_v56, %v481_v58 }
 0x1c2   : > { %v478_v61 = vpop.permute.xlu1 %477  ;;  %v598_v48 = vpop.permute.xlu0 %597 }
 0x1c3   : > { %v1121_v62 = vmul.f32 -1.442695, %v485_v60  ;;  %v482_v63 = vadd.f32 %v478_v61, %v467_v59  ;;  %v603_v1 = vadd.f32 %v598_v48, %v588_v40  ;;  %v1130_v40 = vld [vmem:[%s1949_s10 + $0x20] sm:$0xff]  ;;  %v647_v59 = vstv %s2209_s13  ;;  %v639_v61 = vld [vmem:[%s1949_s10 + $0x8] sm:$0xff]  ;;  %v1127_v48 = vld [vmem:[%s1949_s10 + $0x18] sm:$0xff] }
 0x1c5   : > { %1368 = vpow2.f32 %v1121_v62  ;;  %v2137_v0 = vadd.f32 %v484_v56, %v482_v63 }
 0x1c6   : > { %v600_v53 = vpop.permute.xlu1 %599  ;;  %v613_v3 = vpop.permute.xlu0 %612 }
 0x1c7   : > { %v1122_v4 = vmul.f32 -1.442695, %v2137_v0  ;;  %v618_v5 = vadd.f32 %v613_v3, %v603_v1  ;;  %v604_v6 = vadd.f32 %v600_v53, %v589_v54  ;;  %v1142_v54 = vld [vmem:[%s1949_s10 + $0x50] sm:$0xff]  ;;  %v1135_v3 = vld [vmem:[%s1949_s10 + $0x38] sm:$0xff] }
 0x1c9   : > { %1370 = vpow2.f32 %v1122_v4  ;;  %v2140_v7 = vadd.f32 %v621_v2, %v618_v5  ;;  %v1139_v4 = vld [vmem:[%s1949_s10 + $0x48] sm:$0xff] }
 0x1ca   : > { %v615_v8 = vpop.permute.xlu1 %614 }
 0x1cb   : > { %v1124_v9 = vmul.f32 -1.442695, %v2140_v7  ;;  %v619_v10 = vadd.f32 %v615_v8, %v604_v6 }
 0x1cd   : > { %1372 = vpow2.f32 %v1124_v9  ;;  %v2143_v11 = vadd.f32 %v621_v2, %v619_v10  ;;  %v1131_v2 = vld [vmem:[%s1949_s10 + $0x28] sm:$0xff] }
 0x1cf   : > { %v1369_v12 = vpop.eup %1368  ;;  %v1125_v13 = vmul.f32 -1.442695, %v2143_v11 }
 0x1d0   : > { %v493_v15 = vadd.f32 1.0, %v1369_v12 }
 0x1d1   : > { %1374 = vpow2.f32 %v1125_v13 }
 0x1d2   : > { %1376 = vrcp.f32 %v493_v15 }
 0x1d3   : > { %v1371_v16 = vpop.eup %1370 }
 0x1d4   : > { %v494_v17 = vadd.f32 1.0, %v1371_v16  ;;  %v1143_v16 = vld [vmem:[%s1949_s10 + $0x58] sm:$0xff] }
 0x1d6   : > { %1378 = vrcp.f32 %v494_v17  ;;  %v1147_v17 = vld [vmem:[%s1949_s10 + $0x68] sm:$0xff] }
 0x1d7   : > { %v1373_v18 = vpop.eup %1372 }
 0x1d8   : > { %v630_v19 = vadd.f32 1.0, %v1373_v18  ;;  %v1151_v18 = vld [vmem:[%s1949_s10 + $0x78] sm:$0xff] }
 0x1da   : > { %1380 = vrcp.f32 %v630_v19 }
 0x1db   : > { %v1375_v20 = vpop.eup %1374 }
 0x1dc   : > { %v1377_v23 = vpop.eup %1376  ;;  %v631_v25 = vadd.f32 1.0, %v1375_v20 }
 0x1dd   : > { %v499_v29 = vmul.f32 %v1377_v23, %v485_v60  ;;  %v1150_v60 = vld [vmem:[%s1949_s10 + $0x70] sm:$0xff] }
 0x1de   : > { %1382 = vrcp.f32 %v631_v25 }
 0x1df   : > { %v660_v21 = vmul.f32 %v659_v22, %v499_v29  ;;  %v677_v31 = vmul.f32 %v676_v14, %v499_v29  ;;  %v642_v33 = vmul.f32 %v641_v28, %v499_v29  ;;  %v711_v34 = vmul.f32 %v710_v24, %v499_v29 }
 0x1e0   : > { %v1379_v32 = vpop.eup %1378  ;;  %v728_v35 = vmul.f32 %v727_v26, %v499_v29  ;;  %v762_v36 = vmul.f32 %v761_v27, %v499_v29  ;;  %v694_v50 = vmul.f32 %v693_v30, %v499_v29  ;;  %v745_v58 = vmul.f32 %v744_v37, %v499_v29 }
 0x1e1   : > { %v500_v51 = vmul.f32 %v1379_v32, %v2137_v0  ;;  %v644_v56 = vadd.f32 %v642_v33, %v638_v39  ;;  %v662_v57 = vadd.f32 %v1126_v41, %v660_v21  ;;  %v679_v10 = vadd.f32 %v1130_v40, %v677_v31 }
 0x1e2   : > { %v696_v12 = vadd.f32 %v1134_v49, %v694_v50  ;;  %v713_v13 = vadd.f32 %v1138_v45, %v711_v34  ;;  %v730_v15 = vadd.f32 %v1142_v54, %v728_v35  ;;  %v747_v20 = vadd.f32 %v1146_v55, %v745_v58 }
 0x1e3   : > { %v643_v62 = vmul.f32 %v641_v28, %v500_v51  ;;  %v661_v63 = vmul.f32 %v659_v22, %v500_v51  ;;  %v678_v0 = vmul.f32 %v676_v14, %v500_v51  ;;  %v695_v1 = vmul.f32 %v693_v30, %v500_v51 }
 0x1e4   : > { %v1381_v53 = vpop.eup %1380  ;;  %v712_v5 = vmul.f32 %v710_v24, %v500_v51  ;;  %v729_v6 = vmul.f32 %v727_v26, %v500_v51  ;;  %v746_v8 = vmul.f32 %v744_v37, %v500_v51  ;;  %v763_v9 = vmul.f32 %v761_v27, %v500_v51 }
 0x1e5   : > { %v764_v22 = vadd.f32 %v1150_v60, %v762_v36  ;;  %v645_v23 = vadd.f32 %v643_v62, %v639_v61  ;;  %v663_v14 = vadd.f32 %v1127_v48, %v661_v63  ;;  %v680_v24 = vadd.f32 %v1131_v2, %v678_v0 }
 0x1e6   : > { %v697_v25 = vadd.f32 %v1135_v3, %v695_v1  ;;  %v714_v26 = vadd.f32 %v1139_v4, %v712_v5  ;;  %v636_v27 = vmul.f32 %v1381_v53, %v2140_v7  ;;  %v731_v28 = vadd.f32 %v1143_v16, %v729_v6 }
 0x1e7   : > { %v748_v29 = vadd.f32 %v1147_v17, %v746_v8  ;;  %v765_v30 = vadd.f32 %v1151_v18, %v763_v9  ;;  %v781_v3 = vstv (!%p1154_p12), %s780_s0  ;;  %v803_v6 = vstv (!%p1154_p12), %s1159_s1 }
 0x1e8   : > { %v1383_v19 = vpop.eup %1382  ;;  %v648_v31 = vmul.f32 %v647_v59, %v636_v27  ;;  %v666_v32 = vmul.f32 %v665_v38, %v636_v27  ;;  %v683_v33 = vmul.f32 %v682_v42, %v636_v27  ;;  %v700_v34 = vmul.f32 %v699_v47, %v636_v27 }
 0x1e9   : > { %v637_v21 = vmul.f32 %v1383_v19, %v2143_v11  ;;  %v717_v35 = vmul.f32 %v716_v43, %v636_v27  ;;  %v734_v7 = vmul.f32 %v733_v44, %v636_v27  ;;  %v751_v36 = vmul.f32 %v750_v52, %v636_v27 }
 0x1ea   : > { %v768_v11 = vmul.f32 %v767_v46, %v636_v27  ;;  %v650_v37 = vadd.f32 %v648_v31, %v644_v56  ;;  %v668_v39 = vadd.f32 %v666_v32, %v662_v57  ;;  %v685_v41 = vadd.f32 %v683_v33, %v679_v10 }
 0x1eb   : > { %v702_v40 = vadd.f32 %v700_v34, %v696_v12  ;;  %v719_v49 = vadd.f32 %v717_v35, %v713_v13  ;;  %v736_v50 = vadd.f32 %v734_v7, %v730_v15  ;;  %v753_v51 = vadd.f32 %v751_v36, %v747_v20 }
 0x1ec   : > { %v770_v45 = vadd.f32 %v768_v11, %v764_v22  ;;  %653 = vst.msk [vmem:[%s1949_s10] sm:$0xff] %vm652_vm4, %v650_v37  ;;  %1128 = vst.msk [vmem:[%s1949_s10 + $0x10] sm:$0xff] %vm652_vm4, %v668_v39  ;;  %v649_v54 = vmul.f32 %v647_v59, %v637_v21  ;;  %v667_v55 = vmul.f32 %v665_v38, %v637_v21  ;;  %v825_v8 = vstv (!%p1154_p12), %s1166_s27 }
 0x1ed   : > { %1132 = vst.msk [vmem:[%s1949_s10 + $0x20] sm:$0xff] %vm652_vm4, %v685_v41  ;;  %1136 = vst.msk [vmem:[%s1949_s10 + $0x30] sm:$0xff] %vm652_vm4, %v702_v40  ;;  %v684_v56 = vmul.f32 %v682_v42, %v637_v21  ;;  %v701_v57 = vmul.f32 %v699_v47, %v637_v21  ;;  %v718_v58 = vmul.f32 %v716_v43, %v637_v21  ;;  %v847_v20 = vstv (!%p1154_p12), %s2304_s21 }
 0x1ee   : > { %1140 = vst.msk [vmem:[%s1949_s10 + $0x40] sm:$0xff] %vm652_vm4, %v719_v49  ;;  %1144 = vst.msk [vmem:[%s1949_s10 + $0x50] sm:$0xff] %vm652_vm4, %v736_v50  ;;  %v735_v38 = vmul.f32 %v733_v44, %v637_v21  ;;  %v752_v42 = vmul.f32 %v750_v52, %v637_v21  ;;  %v769_v47 = vmul.f32 %v767_v46, %v637_v21  ;;  %777 = sbr.rel (%p1154_p12) target bundleno = 563 (0x233), region = 68  ;;  %v869_v22 = vstv (!%p1154_p12), %s2306_s17 }
 0x1ef   : > { %1148 = vst.msk [vmem:[%s1949_s10 + $0x60] sm:$0xff] %vm652_vm4, %v753_v51  ;;  %1152 = vst.msk [vmem:[%s1949_s10 + $0x70] sm:$0xff] %vm652_vm4, %v770_v45  ;;  %v651_v59 = vadd.f32 %v649_v54, %v645_v23  ;;  %v669_v60 = vadd.f32 %v667_v55, %v663_v14  ;;  %v686_v61 = vadd.f32 %v684_v56, %v680_v24  ;;  %v891_v32 = vstv (!%p1154_p12), %s2311_s24 }
 0x1f0   : > { %v703_v48 = vadd.f32 %v701_v57, %v697_v25  ;;  %v720_v62 = vadd.f32 %v718_v58, %v714_v26  ;;  %v737_v63 = vadd.f32 %v735_v38, %v731_v28  ;;  %v754_v0 = vadd.f32 %v752_v42, %v748_v29 }
 0x1f1   : > { %v771_v1 = vadd.f32 %v769_v47, %v765_v30  ;;  %654 = vst.msk [vmem:[%s1949_s10 + $0x8] sm:$0xff] %vm652_vm4, %v651_v59  ;;  %1129 = vst.msk [vmem:[%s1949_s10 + $0x18] sm:$0xff] %vm652_vm4, %v669_v60  ;;  %v913_v11 = vstv (!%p1154_p12), %s2316_s6 }
 0x1f2   : > { %1133 = vst.msk [vmem:[%s1949_s10 + $0x28] sm:$0xff] %vm652_vm4, %v686_v61  ;;  %1137 = vst.msk [vmem:[%s1949_s10 + $0x38] sm:$0xff] %vm652_vm4, %v703_v48 }
 0x1f3   : > { %1141 = vst.msk [vmem:[%s1949_s10 + $0x48] sm:$0xff] %vm652_vm4, %v720_v62  ;;  %1145 = vst.msk [vmem:[%s1949_s10 + $0x58] sm:$0xff] %vm652_vm4, %v737_v63  ;;  %v778_v43 = vld [vmem:[%s1949_s10] sm:$0xff] (!%p1154_p12)  ;;  %v1157_v46 = vld [vmem:[%s1949_s10 + $0x10] sm:$0xff] (!%p1154_p12) }
 0x1f4   : > { %1149 = vst.msk [vmem:[%s1949_s10 + $0x68] sm:$0xff] %vm652_vm4, %v754_v0  ;;  %1153 = vst.msk [vmem:[%s1949_s10 + $0x78] sm:$0xff] %vm652_vm4, %v771_v1  ;;  %v1164_v53 = vld [vmem:[%s1949_s10 + $0x20] sm:$0xff] (!%p1154_p12)  ;;  %v2318_v4 = vadd.f32 (!%p1154_p12), %v781_v3, %v778_v43  ;;  %v1171_v9 = vld [vmem:[%s1949_s10 + $0x30] sm:$0xff] (!%p1154_p12)  ;;  %v2323_v10 = vadd.f32 (!%p1154_p12), %v1157_v46, %v803_v6 }
 0x1f5   : > { %v2327_v13 = vadd.f32 %v1164_v53, %v825_v8  ;;  %v1178_v17 = vld [vmem:[%s1949_s10 + $0x40] sm:$0xff]  ;;  %v2340_v25 = vadd.f32 %v1171_v9, %v847_v20  ;;  %v1185_v26 = vld [vmem:[%s1949_s10 + $0x50] sm:$0xff]  ;;  %v935_v63 = vstv %s2368_s7 }
 0x1f6   : > { %v1155_v18 = vmul.f32 -1.442695, %v2318_v4  ;;  %v1160_v14 = vmul.f32 -1.442695, %v2323_v10  ;;  %v2346_v29 = vadd.f32 %v1178_v17, %v869_v22  ;;  %v1192_v33 = vld [vmem:[%s1949_s10 + $0x60] sm:$0xff]  ;;  %v2355_v35 = vadd.f32 %v1185_v26, %v891_v32  ;;  %v1199_v62 = vld [vmem:[%s1949_s10 + $0x70] sm:$0xff] }
 0x1f7   : > { %v1167_v27 = vmul.f32 -1.442695, %v2327_v13  ;;  %v1174_v34 = vmul.f32 -1.442695, %v2340_v25  ;;  %v2362_v39 = vadd.f32 %v1192_v33, %v913_v11 }
 0x1f8   : > { %v779_v44 = vld [vmem:[%s1949_s10 + $0x8] sm:$0xff]  ;;  %v1158_v52 = vld [vmem:[%s1949_s10 + $0x18] sm:$0xff]  ;;  %1384 = vpow2.f32 %v1155_v18  ;;  %v1181_v37 = vmul.f32 -1.442695, %v2346_v29  ;;  %v1188_v40 = vmul.f32 -1.442695, %v2355_v35 }
 0x1f9   : > { %v1165_v2 = vld [vmem:[%s1949_s10 + $0x28] sm:$0xff]  ;;  %v2320_v5 = vadd.f32 %v781_v3, %v779_v44  ;;  %v2325_v12 = vadd.f32 %v1158_v52, %v803_v6  ;;  %v1172_v16 = vld [vmem:[%s1949_s10 + $0x38] sm:$0xff]  ;;  %v1195_v50 = vmul.f32 -1.442695, %v2362_v39  ;;  %v2376_v3 = vadd.f32 %v1199_v62, %v935_v63 }
 0x1fa   : > { %v2329_v15 = vadd.f32 %v1165_v2, %v825_v8  ;;  %v1179_v23 = vld [vmem:[%s1949_s10 + $0x48] sm:$0xff]  ;;  %v2344_v28 = vadd.f32 %v1172_v16, %v847_v20  ;;  %v1186_v30 = vld [vmem:[%s1949_s10 + $0x58] sm:$0xff] }
 0x1fb   : > { %v1156_v19 = vmul.f32 -1.442695, %v2320_v5  ;;  %v1161_v24 = vmul.f32 -1.442695, %v2325_v12  ;;  %v2350_v31 = vadd.f32 %v1179_v23, %v869_v22  ;;  %v2358_v36 = vadd.f32 %v1186_v30, %v891_v32  ;;  %v1193_v60 = vld [vmem:[%s1949_s10 + $0x68] sm:$0xff]  ;;  %v1200_v43 = vld [vmem:[%s1949_s10 + $0x78] sm:$0xff] }
 0x1fc   : > { %v1168_v21 = vmul.f32 -1.442695, %v2329_v15  ;;  %v1175_v7 = vmul.f32 -1.442695, %v2344_v28  ;;  %v2374_v52 = vadd.f32 %v1193_v60, %v913_v11  ;;  %v2378_v9 = vadd.f32 %v1200_v43, %v935_v63 }
 0x1fd   : > { %1386 = vpow2.f32 %v1156_v19  ;;  %v1182_v41 = vmul.f32 -1.442695, %v2350_v31  ;;  %v1189_v49 = vmul.f32 -1.442695, %v2358_v36 }
 0x1fe   : > { %1388 = vpow2.f32 %v1160_v14  ;;  %v1196_v20 = vmul.f32 -1.442695, %v2374_v52  ;;  %v1202_v14 = vmul.f32 -1.442695, %v2376_v3 }
 0x1ff   : > { %1390 = vpow2.f32 %v1161_v24 }
 0x200   : > { %1392 = vpow2.f32 %v1167_v27  ;;  %v1203_v27 = vmul.f32 -1.442695, %v2378_v9 }
 0x201   : > { %1394 = vpow2.f32 %v1168_v21 }
 0x202   : > { %1396 = vpow2.f32 %v1174_v34  ;;  %v1385_v51 = vpop.eup %1384 }
 0x203   : > { %1398 = vpow2.f32 %v1175_v7  ;;  %v790_v54 = vadd.f32 1.0, %v1385_v51 }
 0x204   : > { %1400 = vpow2.f32 %v1181_v37 }
 0x205   : > { %1402 = vpow2.f32 %v1182_v41 }
 0x206   : > { %1404 = vpow2.f32 %v1188_v40 }
 0x207   : > { %v1387_v45 = vpop.eup %1386  ;;  %1406 = vpow2.f32 %v1189_v49 }
 0x208   : > { %v1389_v55 = vpop.eup %1388  ;;  %v791_v56 = vadd.f32 1.0, %v1387_v45  ;;  %1408 = vpow2.f32 %v1195_v50 }
 0x209   : > { %v1391_v57 = vpop.eup %1390  ;;  %1410 = vrcp.f32 %v790_v54  ;;  %v812_v58 = vadd.f32 1.0, %v1389_v55 }
 0x20a   : > { %v1393_v38 = vpop.eup %1392  ;;  %1412 = vrcp.f32 %v791_v56  ;;  %v813_v42 = vadd.f32 1.0, %v1391_v57 }
 0x20b   : > { %v1395_v47 = vpop.eup %1394  ;;  %1414 = vrcp.f32 %v812_v58  ;;  %v834_v59 = vadd.f32 1.0, %v1393_v38 }
 0x20c   : > { %v1397_v61 = vpop.eup %1396  ;;  %1416 = vrcp.f32 %v813_v42  ;;  %v835_v48 = vadd.f32 1.0, %v1395_v47 }
 0x20d   : > { %v1399_v0 = vpop.eup %1398  ;;  %1418 = vrcp.f32 %v834_v59  ;;  %v856_v1 = vadd.f32 1.0, %v1397_v61 }
 0x20e   : > { %v1401_v44 = vpop.eup %1400  ;;  %1420 = vrcp.f32 %v835_v48  ;;  %v857_v46 = vadd.f32 1.0, %v1399_v0 }
 0x20f   : > { %v1403_v53 = vpop.eup %1402  ;;  %1422 = vrcp.f32 %v856_v1  ;;  %v878_v2 = vadd.f32 1.0, %v1401_v44 }
 0x210   : > { %v1405_v6 = vpop.eup %1404  ;;  %1424 = vrcp.f32 %v857_v46  ;;  %v879_v8 = vadd.f32 1.0, %v1403_v53 }
 0x211   : > { %v1407_v16 = vpop.eup %1406  ;;  %1426 = vrcp.f32 %v878_v2  ;;  %v900_v17 = vadd.f32 1.0, %v1405_v6 }
 0x212   : > { %v1409_v18 = vpop.eup %1408  ;;  %1428 = vrcp.f32 %v879_v8  ;;  %v901_v19 = vadd.f32 1.0, %v1407_v16 }
 0x213   : > { %v1411_v22 = vpop.eup %1410  ;;  %1430 = vrcp.f32 %v900_v17  ;;  %v922_v23 = vadd.f32 1.0, %v1409_v18 }
 0x214   : > { %v1413_v24 = vpop.eup %1412  ;;  %v796_v26 = vmul.f32 %v1411_v22, %v2318_v4  ;;  %1432 = vrcp.f32 %v901_v19 }
 0x215   : > { %v1415_v30 = vpop.eup %1414  ;;  %v797_v21 = vmul.f32 %v1413_v24, %v2320_v5  ;;  %1434 = vrcp.f32 %v922_v23 }
 0x216   : > { %v1417_v32 = vpop.eup %1416  ;;  %798 = vst.msk [vmem:[%s1949_s10] sm:$0xff] %vm652_vm4, %v796_v26  ;;  %v818_v33 = vmul.f32 %v1415_v30, %v2323_v10  ;;  %1436 = vpow2.f32 %v1196_v20 }
 0x217   : > { %v1419_v34 = vpop.eup %1418  ;;  %799 = vst.msk [vmem:[%s1949_s10 + $0x8] sm:$0xff] %vm652_vm4, %v797_v21  ;;  %v819_v4 = vmul.f32 %v1417_v32, %v2325_v12  ;;  %1438 = vpow2.f32 %v1202_v14 }
 0x218   : > { %v1421_v7 = vpop.eup %1420  ;;  %1162 = vst.msk [vmem:[%s1949_s10 + $0x10] sm:$0xff] %vm652_vm4, %v818_v33  ;;  %v840_v5 = vmul.f32 %v1419_v34, %v2327_v13  ;;  %1440 = vpow2.f32 %v1203_v27 }
 0x219   : > { %v1423_v11 = vpop.eup %1422  ;;  %1163 = vst.msk [vmem:[%s1949_s10 + $0x18] sm:$0xff] %vm652_vm4, %v819_v4  ;;  %v841_v10 = vmul.f32 %v1421_v7, %v2329_v15 }
 0x21a   : > { %v1425_v37 = vpop.eup %1424  ;;  %1169 = vst.msk [vmem:[%s1949_s10 + $0x20] sm:$0xff] %vm652_vm4, %v840_v5  ;;  %v862_v12 = vmul.f32 %v1423_v11, %v2340_v25 }
 0x21b   : > { %v1427_v41 = vpop.eup %1426  ;;  %1170 = vst.msk [vmem:[%s1949_s10 + $0x28] sm:$0xff] %vm652_vm4, %v841_v10  ;;  %v863_v40 = vmul.f32 %v1425_v37, %v2344_v28 }
 0x21c   : > { %v1429_v13 = vpop.eup %1428  ;;  %1176 = vst.msk [vmem:[%s1949_s10 + $0x30] sm:$0xff] %vm652_vm4, %v862_v12  ;;  %v884_v49 = vmul.f32 %v1427_v41, %v2346_v29 }
 0x21d   : > { %v1431_v50 = vpop.eup %1430  ;;  %1177 = vst.msk [vmem:[%s1949_s10 + $0x38] sm:$0xff] %vm652_vm4, %v863_v40  ;;  %v885_v15 = vmul.f32 %v1429_v13, %v2350_v31 }
 0x21e   : > { %v1433_v51 = vpop.eup %1432  ;;  %1183 = vst.msk [vmem:[%s1949_s10 + $0x40] sm:$0xff] %vm652_vm4, %v884_v49  ;;  %v906_v25 = vmul.f32 %v1431_v50, %v2355_v35 }
 0x21f   : > { %v1435_v45 = vpop.eup %1434  ;;  %1184 = vst.msk [vmem:[%s1949_s10 + $0x48] sm:$0xff] %vm652_vm4, %v885_v15  ;;  %v907_v28 = vmul.f32 %v1433_v51, %v2358_v36 }
 0x220   : > { %v1437_v54 = vpop.eup %1436  ;;  %1190 = vst.msk [vmem:[%s1949_s10 + $0x50] sm:$0xff] %vm652_vm4, %v906_v25  ;;  %v928_v29 = vmul.f32 %v1435_v45, %v2362_v39 }
 0x221   : > { %v1439_v55 = vpop.eup %1438  ;;  %1191 = vst.msk [vmem:[%s1949_s10 + $0x58] sm:$0xff] %vm652_vm4, %v907_v28  ;;  %v923_v31 = vadd.f32 1.0, %v1437_v54 }
 0x222   : > { %v1441_v56 = vpop.eup %1440  ;;  %1197 = vst.msk [vmem:[%s1949_s10 + $0x60] sm:$0xff] %vm652_vm4, %v928_v29  ;;  %v944_v35 = vadd.f32 1.0, %v1439_v55 }
 0x223   : > { %1442 = vrcp.f32 %v923_v31  ;;  %v945_v57 = vadd.f32 1.0, %v1441_v56 }
 0x224   : > { %1444 = vrcp.f32 %v944_v35 }
 0x225   : > { %1446 = vrcp.f32 %v945_v57 }
 0x22d   : > { %v1443_v36 = vpop.eup %1442 }
 0x22e   : > { %v1445_v58 = vpop.eup %1444  ;;  %v929_v38 = vmul.f32 %v1443_v36, %v2374_v52 }
 0x22f   : > { %v1447_v39 = vpop.eup %1446  ;;  %v950_v42 = vmul.f32 %v1445_v58, %v2376_v3 }
 0x230   : > { %1198 = vst.msk [vmem:[%s1949_s10 + $0x68] sm:$0xff] %vm652_vm4, %v929_v38  ;;  %v951_v47 = vmul.f32 %v1447_v39, %v2378_v9 }
 0x231   : > { %1204 = vst.msk [vmem:[%s1949_s10 + $0x70] sm:$0xff] %vm652_vm4, %v950_v42 }
 0x232   : > { %1205 = vst.msk [vmem:[%s1949_s10 + $0x78] sm:$0xff] %vm652_vm4, %v951_v47 }
 0x233 PF: > { %s2561_s3 = sld [smem:[#allocation20_spill]]  ;;  %s2562_s18 = sld [smem:[#allocation23_spill]] }
 0x234   : > { %s2563_s2 = sld [smem:[#allocation33_spill]]  ;;  %s968_s4 = sshll.u32 %s1949_s10, 4  ;;  %s2438_s4 = int_to_ptr.vmem [resolvable:$true] %s968_s4 }
 0x235   : > { %s2564_s14 = sand.u32 1, %s1634_s19   ;;  %s1536_s25 = scalar_lea.vmem %s2438_s4, 2048 }
 0x236   : > { %s2442_s15 = scalar_lea.sflag [#allocation5], %s2564_s14  ;;  %p1537_p9 = scmp.ne.s32.totalorder %s2438_s4, %s1536_s25 }
 0x237   : > { %s1683_s12 = smov [#allocation13]  }
 0x238   : > { %s1540_s30 = sshll.u32 %s1683_s12, 4  ;;  %s1541_s30 = int_to_ptr.vmem [resolvable:$false] %s1540_s30 }
 0x239   : > { %s1215_s26 = sshll.u32 %s2561_s3, 11  ;;  %p2565_p0 = scmp.ne.s32.totalorder %s2562_s18, 0 }
 0x23a   : > { %s2435_s5 = scalar_lea.hbm %s2563_s2, %s1215_s26  ;;  %s1542_s29 = scalar_lea.vmem %s1541_s30, 4096 }
 0x23b   : > { %p1538_p13 = pnand %p1537_p9, %p2565_p0  ;;  %p1543_p10 = scmp.lt.s32.totalorder %s2438_s4, %s1541_s30 }
 0x23c   : > { %p1544_p6 = scmp.lt.s32.totalorder %s1542_s29, %s1536_s25 }
 0x23d   : > { %p1539_p8 = pneg %p1538_p13 }
 0x23e   : > { %p1545_p2 = por %p1544_p6, %p1543_p10 }
 0x240   : > { %p1546_p3 = pnand %p1545_p2, %p1539_p8 }
 0x242   : > { %1549 = shalt.err (!%p1546_p3)
}
 0x243   : > { %s1550_s10 = scalar_lea.hbm %s2435_s5, 2048  ;;  %s1554_s0 = scalar_lea.hbm %s2563_s2, 4096 }
 0x244   : > { %p1551_p5 = scmp.ne.s32.totalorder %s2435_s5, %s1550_s10  ;;  %p1555_p4 = scmp.lt.u32.totalorder %s2435_s5, %s2563_s2 }
 0x245   : > { %p1556_p11 = scmp.lt.u32.totalorder %s1554_s0, %s1550_s10  ;;  %p1558_p9 = scmp.lt.u32.totalorder %s1550_s10, %s2435_s5 }
 0x246   : > { %p1552_p7 = pnand %p1551_p5, %p2565_p0 }
 0x247   : > { %p1557_p12 = por %p1556_p11, %p1555_p4 }
 0x248   : > { %p1553_p1 = pneg %p1552_p7 }
 0x249   : > { %p1559_p13 = por %p1558_p9, %p1557_p12 }
 0x24b   : > { %p1560_p8 = pnand %p1559_p13, %p1553_p1 }
 0x24d   : > { %1563 = shalt.err (!%p1560_p8)
}
 0x24e   : > { %s1684_s21 = smov 128   ;;  %s1685_s17 = smov 8  }
 0x24f   : > { %1235 = dma.vmem_to_hbm [thread:$0]  (%p2565_p0), %s2438_s4, 2048, %s2435_s5, %s2442_s15, %s1684_s21, %s1684_s21, %s1685_s17  }
 0x250 PF: > { %s2566_s24 = sld [smem:[#allocation19_spill]]  ;;  %s2567_s6 = sld [smem:[#allocation24_spill]] }
 0x251   : > { %p1267_p10 = scmp.ge.s32.totalorder %s1670_s28, 2 }
 0x256   : > { %s983_s7 = sand.u32 1, %s2566_s24   ;;  %p2568_p6 = scmp.ne.s32.totalorder %s2567_s6, 0 }
 0x257   : > { %s984_s3 = scalar_lea.sflag [#allocation5], %s983_s7 }
 0x258   : > { %p1255_p2 = pnand %p1267_p10, %p2568_p6 }
 0x25a   : > { %1625 = dma.done.wait (!%p1255_p2), %s984_s3, 2048  }
 0x25b   : > { %1627 = vsyncadd (!%p1255_p2), %s984_s3, 4294965248  ;;  %s24_s28 = sadd.s32 1, %s1670_s28   ;;  %s2569_s26 = sld [smem:[#allocation27_spill]] }
 0x25c   : > { %p21_p3 = scmp.ge.s32.totalorder %s24_s28, 6   ;;  %s2570_s24 = sld [smem:[#allocation21_spill]] }
 0x25d   : > { %s2571_s25 = sld [smem:[#allocation22_spill]]  ;;  %s2572_s8 = sld [smem:[#allocation25_spill]] }
 0x25e   : > { %s2573_s27 = sld [smem:[#allocation26_spill]]  ;;  %s2574_s18 = smov %s1634_s19 }
 0x25f   : > { %s2575_s19 = smov %s1638_s20  ;;  %s2576_s20 = smov %s1875_s16 }
 0x260   : > { %s2577_s21 = smov %s1646_s22  ;;  %s2578_s22 = smov %s1650_s23 }
 0x261   : > { %s2579_s23 = smov %s2569_s26  ;;  %23 = sbr.rel (!%p21_p3) target bundleno = 19 (0x13), region = 119 }
 0x263   : > { %s2580_s26 = smov %s2572_s8 }
 0x268   :  { %989 = vsyncpa [#allocation4], 1 }
 0x269   :  { %991 = vsyncpa [#allocation4 + $0x1], 1 }
 0x26a   :  { %992 = vsyncpa [#allocation5], 1 }
 0x26b   :  { %994 = vsyncpa [#allocation5 + $0x1], 1 }
 0x26c   :  { %995 = vsyncpa [#allocation6], 1 }
 0x26d   :  { %997 = vsyncpa [#allocation6 + $0x1], 1 }
 0x26e   :  { %998 = vsyncpa [#allocation7], 1 }
 0x26f   :  { %1000 = vsyncpa [#allocation7 + $0x1], 1 }
 0x270   :  { %1001 = vsyncpa [#allocation11], 1 }

</bundles_post_ra>
